<compile_context>
chip_gen: v7x
topology: tpu7x:2x2x1
jax: 0.10.0
libtpu: 0.0.40
codegen_flags: <defaults>
</compile_context>

<pallas_src>
import functools

import jax
import jax.numpy as jnp
from jax.experimental import pallas as pl
from jax.experimental.pallas import tpu as pltpu


def _dot_t(a, b):
    """a: (M, D), b: (N, D) -> (M, N), contracting the last dim of both."""
    return jax.lax.dot_general(
        a, b, (((1,), (1,)), ((), ())), preferred_element_type=jnp.float32
    )


def _attention_pool_kernel(
    x_ref,        # (1, HW, C)   spatial tokens of one batch element
    pos0_ref,     # (1, C)       positional embedding of the pooled token
    possp_ref,    # (HW, C)      positional embedding of the spatial tokens
    wq_ref, bq_ref,   # (C, C), (1, C)     weights pre-transposed to (in, out)
    wk_ref, bk_ref,   # (C, C), (1, C)
    wv_ref, bv_ref,   # (C, C), (1, C)
    wc_ref, bc_ref,   # (C, C_out), (1, C_out)
    o_ref,        # (1, 1, C_out)
    *,
    num_heads,
    head_dim,
):
    f32 = jnp.float32
    x = x_ref[0].astype(f32)                                   # (HW, C)

    # Token construction: mean-pooled token + positional embeddings.
    tok0 = jnp.mean(x, axis=0, keepdims=True) + pos0_ref[...].astype(f32)  # (1, C)
    toksp = x + possp_ref[...].astype(f32)                                 # (HW, C)

    # Projections (MXU). Only the pooled token's query is needed, since the
    # module returns x[0] only.
    q = jnp.dot(tok0, wq_ref[...], preferred_element_type=f32) + bq_ref[...]     # (1, C)
    k0 = jnp.dot(tok0, wk_ref[...], preferred_element_type=f32) + bk_ref[...]    # (1, C)
    ksp = jnp.dot(toksp, wk_ref[...], preferred_element_type=f32) + bk_ref[...]  # (HW, C)
    v0 = jnp.dot(tok0, wv_ref[...], preferred_element_type=f32) + bv_ref[...]    # (1, C)
    vsp = jnp.dot(toksp, wv_ref[...], preferred_element_type=f32) + bv_ref[...]  # (HW, C)

    scale = jnp.float32(head_dim ** -0.5)

    # Output projection accumulated per head (avoids a lane-axis concat):
    # out = sum_h softmax_h(q_h . K_h) @ V_h @ Wc[hD:(h+1)D, :]  + bc
    out = bc_ref[...].astype(f32)                              # (1, C_out)
    for h in range(num_heads):
        lsl = slice(h * head_dim, (h + 1) * head_dim)          # lane slice (per head)
        qh = q[:, lsl] * scale                                 # (1, D)
        s0 = _dot_t(qh, k0[:, lsl])                            # (1, 1)
        ssp = _dot_t(qh, ksp[:, lsl])                          # (1, HW)

        # Two-block softmax over [pooled token, spatial tokens].
        m = jnp.maximum(jnp.max(ssp, axis=-1, keepdims=True), s0)   # (1, 1)
        e0 = jnp.exp(s0 - m)                                        # (1, 1)
        esp = jnp.exp(ssp - m)                                      # (1, HW)
        denom = e0 + jnp.sum(esp, axis=-1, keepdims=True)           # (1, 1)

        num = e0 * v0[:, lsl] + jnp.dot(
            esp, vsp[:, lsl], preferred_element_type=f32
        )                                                           # (1, D)
        head_out = num / denom                                      # (1, D)

        out = out + jnp.dot(
            head_out,
            wc_ref[h * head_dim:(h + 1) * head_dim, :],             # (D, C_out)
            preferred_element_type=f32,
        )

    o_ref[0] = out.astype(o_ref.dtype)


def attention_pool2d(x, params, num_heads):
    """JAX/Pallas equivalent of AttentionPool2d.forward (returns x[0])."""
    pos, wq, bq, wk, bk, wv, bv, wc, bc = params   # PyTorch (out, in) conventions
    B, C, H, W = x.shape
    HW = H * W
    L = HW + 1
    assert pos.shape == (L, C)
    assert C % num_heads == 0
    head_dim = C // num_heads
    C_out = wc.shape[0]

    # NCHW -> (B, HW, C): one row of spatial tokens per batch element.
    x_sp = x.reshape(B, C, HW).transpose(0, 2, 1)

    to2d = lambda v: v.reshape(1, -1)
    args = (
        x_sp,
        pos[0:1, :], pos[1:, :],
        wq.T, to2d(bq),
        wk.T, to2d(bk),
        wv.T, to2d(bv),
        wc.T, to2d(bc),
    )

    def _full(a):
        nd = a.ndim
        return pl.BlockSpec(a.shape, lambda b, _nd=nd: (0,) * _nd)

    in_specs = [pl.BlockSpec((1, HW, C), lambda b: (b, 0, 0))]
    in_specs += [_full(a) for a in args[1:]]

    kernel = functools.partial(
        _attention_pool_kernel, num_heads=num_heads, head_dim=head_dim
    )

    out = pl.pallas_call(
        kernel,
        out_shape=jax.ShapeDtypeStruct((B, 1, C_out), x.dtype),
        grid=(B,),
        in_specs=in_specs,
        out_specs=pl.BlockSpec((1, 1, C_out), lambda b: (b, 0, 0)),
        compiler_params=pltpu.CompilerParams(
            dimension_semantics=("parallel",),   # shard batch over v7x's 2 TCs
        ),
    )(*args)
    return out[:, 0, :]


def attention_pool2d_ref(x, params, num_heads):
    """Pure-JAX reference mirroring F.multi_head_attention_forward path."""
    pos, wq, bq, wk, bk, wv, bv, wc, bc = params
    B, C, H, W = x.shape
    HW = H * W
    D = C // num_heads
    xs = x.reshape(B, C, HW).transpose(2, 0, 1)                       # (HW, B, C)
    xs = jnp.concatenate([xs.mean(axis=0, keepdims=True), xs], axis=0)  # (L, B, C)
    xs = xs + pos[:, None, :]
    q = xs[0] @ wq.T + bq                                             # (B, C)
    k = xs @ wk.T + bk                                                # (L, B, C)
    v = xs @ wv.T + bv
    qh = q.reshape(B, num_heads, D)
    kh = k.reshape(-1, B, num_heads, D)
    vh = v.reshape(-1, B, num_heads, D)
    s = jnp.einsum("bhd,lbhd->bhl", qh, kh) * (D ** -0.5)
    p = jax.nn.softmax(s, axis=-1)
    o = jnp.einsum("bhl,lbhd->bhd", p, vh).reshape(B, C)
    return o @ wc.T + bc


if __name__ == "__main__":
    key = jax.random.PRNGKey(0)
    B, spacial_dim, embed_dim, num_heads, output_dim = 2, 8, 128, 4, 64
    HW = spacial_dim * spacial_dim
    L = HW + 1

    keys = jax.random.split(key, 6)
    x = jax.random.normal(
        keys[0], (B, embed_dim, spacial_dim, spacial_dim), jnp.float32
    )
    pos = jax.random.normal(keys[1], (L, embed_dim), jnp.float32) / embed_dim ** 0.5

    def lin(k, out_d, in_d):
        kw, kb = jax.random.split(k)
        w = jax.random.normal(kw, (out_d, in_d), jnp.float32) * (in_d ** -0.5)
        b = jax.random.normal(kb, (out_d,), jnp.float32) * 0.02
        return w, b

    wq, bq = lin(keys[2], embed_dim, embed_dim)
    wk, bk = lin(keys[3], embed_dim, embed_dim)
    wv, bv = lin(keys[4], embed_dim, embed_dim)
    wc, bc = lin(keys[5], output_dim, embed_dim)
    params = (pos, wq, bq, wk, bk, wv, bv, wc, bc)

    y = attention_pool2d(x, params, num_heads)
    y = jax.block_until_ready(y)
    assert y.shape == (B, output_dim)

    y_ref = attention_pool2d_ref(x, params, num_heads)
    max_err = float(jnp.max(jnp.abs(y - y_ref)))
    assert bool(jnp.allclose(y, y_ref, atol=2e-3, rtol=2e-3)), max_err

    print("KERNEL_OK")
</pallas_src>

<mosaic_0001>
module attributes {stable_mosaic.version = 11 : i64} {
  func.func @_attention_pool_kernel(%arg0: i32, %arg1: memref<1x64x128xf32, #tpu.memory_space<vmem>>, %arg2: memref<1x128xf32, #tpu.memory_space<vmem>>, %arg3: memref<64x128xf32, #tpu.memory_space<vmem>>, %arg4: memref<128x128xf32, #tpu.memory_space<vmem>>, %arg5: memref<1x128xf32, #tpu.memory_space<vmem>>, %arg6: memref<128x128xf32, #tpu.memory_space<vmem>>, %arg7: memref<1x128xf32, #tpu.memory_space<vmem>>, %arg8: memref<128x128xf32, #tpu.memory_space<vmem>>, %arg9: memref<1x128xf32, #tpu.memory_space<vmem>>, %arg10: memref<128x64xf32, #tpu.memory_space<vmem>>, %arg11: memref<1x64xf32, #tpu.memory_space<vmem>>, %arg12: memref<1x1x64xf32, #tpu.memory_space<vmem>>) attributes {dimension_semantics = [#tpu.dimension_semantics<parallel>], iteration_bounds = array<i64: 2>, scalar_prefetch = 0 : i64, scratch_operands = 0 : i64, tpu.core_type = #tpu.core_type<tc>, window_params = [{transform_indices = @transform_0, window_bounds = array<i64: 1, 64, 128>}, {pipeline_mode = #tpu.pipeline_mode<synchronous>, transform_indices = @transform_1, window_bounds = array<i64: 1, 128>}, {pipeline_mode = #tpu.pipeline_mode<synchronous>, transform_indices = @transform_2, window_bounds = array<i64: 64, 128>}, {pipeline_mode = #tpu.pipeline_mode<synchronous>, transform_indices = @transform_3, window_bounds = array<i64: 128, 128>}, {pipeline_mode = #tpu.pipeline_mode<synchronous>, transform_indices = @transform_4, window_bounds = array<i64: 1, 128>}, {pipeline_mode = #tpu.pipeline_mode<synchronous>, transform_indices = @transform_5, window_bounds = array<i64: 128, 128>}, {pipeline_mode = #tpu.pipeline_mode<synchronous>, transform_indices = @transform_6, window_bounds = array<i64: 1, 128>}, {pipeline_mode = #tpu.pipeline_mode<synchronous>, transform_indices = @transform_7, window_bounds = array<i64: 128, 128>}, {pipeline_mode = #tpu.pipeline_mode<synchronous>, transform_indices = @transform_8, window_bounds = array<i64: 1, 128>}, {pipeline_mode = #tpu.pipeline_mode<synchronous>, transform_indices = @transform_9, window_bounds = array<i64: 128, 64>}, {pipeline_mode = #tpu.pipeline_mode<synchronous>, transform_indices = @transform_10, window_bounds = array<i64: 1, 64>}, {transform_indices = @transform_11, window_bounds = array<i64: 1, 1, 64>}]} {
    %c0 = arith.constant 0 : index
    %c0_0 = arith.constant 0 : index
    %c0_1 = arith.constant 0 : index
    %0 = vector.load %arg1[%c0, %c0_0, %c0_1] : memref<1x64x128xf32, #tpu.memory_space<vmem>>, vector<1x64x128xf32>
    %1 = vector.shape_cast %0 : vector<1x64x128xf32> to vector<64x128xf32>
    %cst = arith.constant dense<0.000000e+00> : vector<128xf32>
    %2 = vector.multi_reduction <add>, %1, %cst [0] : vector<64x128xf32> to vector<128xf32>
    %3 = vector.shape_cast %2 : vector<128xf32> to vector<1x128xf32>
    %cst_2 = arith.constant 6.400000e+01 : f32
    %4 = vector.broadcast %cst_2 : f32 to vector<1x128xf32>
    %5 = arith.divf %3, %4 : vector<1x128xf32>
    %c0_3 = arith.constant 0 : index
    %c0_4 = arith.constant 0 : index
    %6 = vector.load %arg2[%c0_3, %c0_4] : memref<1x128xf32, #tpu.memory_space<vmem>>, vector<1x128xf32>
    %7 = arith.addf %5, %6 : vector<1x128xf32>
    %c0_5 = arith.constant 0 : index
    %c0_6 = arith.constant 0 : index
    %8 = vector.load %arg3[%c0_5, %c0_6] : memref<64x128xf32, #tpu.memory_space<vmem>>, vector<64x128xf32>
    %9 = arith.addf %1, %8 : vector<64x128xf32>
    %c0_7 = arith.constant 0 : index
    %c0_8 = arith.constant 0 : index
    %10 = vector.load %arg4[%c0_7, %c0_8] : memref<128x128xf32, #tpu.memory_space<vmem>>, vector<128x128xf32>
    %cst_9 = arith.constant dense<0.000000e+00> : vector<1x128xf32>
    %11 = tpu.matmul %7, %10, %cst_9 {dimension_numbers = #tpu.dot_dimension_numbers<[1], [0], [0], [1], [0, 0, 1, 1], [], []>} : vector<1x128xf32>, vector<128x128xf32>, vector<1x128xf32> -> vector<1x128xf32>
    %c0_10 = arith.constant 0 : index
    %c0_11 = arith.constant 0 : index
    %12 = vector.load %arg5[%c0_10, %c0_11] : memref<1x128xf32, #tpu.memory_space<vmem>>, vector<1x128xf32>
    %13 = arith.addf %11, %12 : vector<1x128xf32>
    %c0_12 = arith.constant 0 : index
    %c0_13 = arith.constant 0 : index
    %14 = vector.load %arg6[%c0_12, %c0_13] : memref<128x128xf32, #tpu.memory_space<vmem>>, vector<128x128xf32>
    %cst_14 = arith.constant dense<0.000000e+00> : vector<1x128xf32>
    %15 = tpu.matmul %7, %14, %cst_14 {dimension_numbers = #tpu.dot_dimension_numbers<[1], [0], [0], [1], [0, 0, 1, 1], [], []>} : vector<1x128xf32>, vector<128x128xf32>, vector<1x128xf32> -> vector<1x128xf32>
    %c0_15 = arith.constant 0 : index
    %c0_16 = arith.constant 0 : index
    %16 = vector.load %arg7[%c0_15, %c0_16] : memref<1x128xf32, #tpu.memory_space<vmem>>, vector<1x128xf32>
    %17 = arith.addf %15, %16 : vector<1x128xf32>
    %c0_17 = arith.constant 0 : index
    %c0_18 = arith.constant 0 : index
    %18 = vector.load %arg6[%c0_17, %c0_18] : memref<128x128xf32, #tpu.memory_space<vmem>>, vector<128x128xf32>
    %cst_19 = arith.constant dense<0.000000e+00> : vector<64x128xf32>
    %19 = tpu.matmul %9, %18, %cst_19 {dimension_numbers = #tpu.dot_dimension_numbers<[1], [0], [0], [1], [0, 0, 1, 1], [], []>} : vector<64x128xf32>, vector<128x128xf32>, vector<64x128xf32> -> vector<64x128xf32>
    %c0_20 = arith.constant 0 : index
    %c0_21 = arith.constant 0 : index
    %20 = vector.load %arg7[%c0_20, %c0_21] : memref<1x128xf32, #tpu.memory_space<vmem>>, vector<1x128xf32>
    %21 = vector.broadcast %20 : vector<1x128xf32> to vector<64x128xf32>
    %22 = arith.addf %19, %21 : vector<64x128xf32>
    %c0_22 = arith.constant 0 : index
    %c0_23 = arith.constant 0 : index
    %23 = vector.load %arg8[%c0_22, %c0_23] : memref<128x128xf32, #tpu.memory_space<vmem>>, vector<128x128xf32>
    %cst_24 = arith.constant dense<0.000000e+00> : vector<1x128xf32>
    %24 = tpu.matmul %7, %23, %cst_24 {dimension_numbers = #tpu.dot_dimension_numbers<[1], [0], [0], [1], [0, 0, 1, 1], [], []>} : vector<1x128xf32>, vector<128x128xf32>, vector<1x128xf32> -> vector<1x128xf32>
    %c0_25 = arith.constant 0 : index
    %c0_26 = arith.constant 0 : index
    %25 = vector.load %arg9[%c0_25, %c0_26] : memref<1x128xf32, #tpu.memory_space<vmem>>, vector<1x128xf32>
    %26 = arith.addf %24, %25 : vector<1x128xf32>
    %c0_27 = arith.constant 0 : index
    %c0_28 = arith.constant 0 : index
    %27 = vector.load %arg8[%c0_27, %c0_28] : memref<128x128xf32, #tpu.memory_space<vmem>>, vector<128x128xf32>
    %cst_29 = arith.constant dense<0.000000e+00> : vector<64x128xf32>
    %28 = tpu.matmul %9, %27, %cst_29 {dimension_numbers = #tpu.dot_dimension_numbers<[1], [0], [0], [1], [0, 0, 1, 1], [], []>} : vector<64x128xf32>, vector<128x128xf32>, vector<64x128xf32> -> vector<64x128xf32>
    %c0_30 = arith.constant 0 : index
    %c0_31 = arith.constant 0 : index
    %29 = vector.load %arg9[%c0_30, %c0_31] : memref<1x128xf32, #tpu.memory_space<vmem>>, vector<1x128xf32>
    %30 = vector.broadcast %29 : vector<1x128xf32> to vector<64x128xf32>
    %31 = arith.addf %28, %30 : vector<64x128xf32>
    %c0_32 = arith.constant 0 : index
    %c0_33 = arith.constant 0 : index
    %32 = vector.load %arg11[%c0_32, %c0_33] : memref<1x64xf32, #tpu.memory_space<vmem>>, vector<1x64xf32>
    %33 = vector.extract_strided_slice %13 {offsets = [0, 0], sizes = [1, 32], strides = [1, 1]} : vector<1x128xf32> to vector<1x32xf32>
    %cst_34 = arith.constant 0.176776692 : f32
    %34 = vector.broadcast %cst_34 : f32 to vector<1x32xf32>
    %35 = arith.mulf %33, %34 : vector<1x32xf32>
    %36 = vector.extract_strided_slice %17 {offsets = [0, 0], sizes = [1, 32], strides = [1, 1]} : vector<1x128xf32> to vector<1x32xf32>
    %cst_35 = arith.constant dense<0.000000e+00> : vector<1x1xf32>
    %37 = tpu.matmul %35, %36, %cst_35 {dimension_numbers = #tpu.dot_dimension_numbers<[1], [1], [0], [0], [0, 0, 1, 0], [], []>} : vector<1x32xf32>, vector<1x32xf32>, vector<1x1xf32> -> vector<1x1xf32>
    %38 = vector.extract_strided_slice %22 {offsets = [0, 0], sizes = [64, 32], strides = [1, 1]} : vector<64x128xf32> to vector<64x32xf32>
    %cst_36 = arith.constant dense<0.000000e+00> : vector<1x64xf32>
    %39 = tpu.matmul %35, %38, %cst_36 {dimension_numbers = #tpu.dot_dimension_numbers<[1], [1], [0], [0], [0, 0, 1, 0], [], []>} : vector<1x32xf32>, vector<64x32xf32>, vector<1x64xf32> -> vector<1x64xf32>
    %cst_37 = arith.constant dense<0xFF800000> : vector<1xf32>
    %40 = vector.multi_reduction <maximumf>, %39, %cst_37 [1] : vector<1x64xf32> to vector<1xf32>
    %41 = vector.shape_cast %40 : vector<1xf32> to vector<1x1xf32>
    %42 = arith.maximumf %41, %37 : vector<1x1xf32>
    %43 = arith.subf %37, %42 : vector<1x1xf32>
    %44 = math.exp %43 : vector<1x1xf32>
    %45 = vector.broadcast %42 : vector<1x1xf32> to vector<1x64xf32>
    %46 = arith.subf %39, %45 : vector<1x64xf32>
    %47 = math.exp %46 : vector<1x64xf32>
    %cst_38 = arith.constant dense<0.000000e+00> : vector<1xf32>
    %48 = vector.multi_reduction <add>, %47, %cst_38 [1] : vector<1x64xf32> to vector<1xf32>
    %49 = vector.shape_cast %48 : vector<1xf32> to vector<1x1xf32>
    %50 = arith.addf %44, %49 : vector<1x1xf32>
    %51 = vector.extract_strided_slice %26 {offsets = [0, 0], sizes = [1, 32], strides = [1, 1]} : vector<1x128xf32> to vector<1x32xf32>
    %52 = vector.broadcast %44 : vector<1x1xf32> to vector<1x32xf32>
    %53 = arith.mulf %52, %51 : vector<1x32xf32>
    %54 = vector.extract_strided_slice %31 {offsets = [0, 0], sizes = [64, 32], strides = [1, 1]} : vector<64x128xf32> to vector<64x32xf32>
    %cst_39 = arith.constant dense<0.000000e+00> : vector<1x32xf32>
    %55 = tpu.matmul %47, %54, %cst_39 {dimension_numbers = #tpu.dot_dimension_numbers<[1], [0], [0], [1], [0, 0, 1, 1], [], []>} : vector<1x64xf32>, vector<64x32xf32>, vector<1x32xf32> -> vector<1x32xf32>
    %56 = arith.addf %53, %55 : vector<1x32xf32>
    %57 = vector.broadcast %50 : vector<1x1xf32> to vector<1x32xf32>
    %58 = arith.divf %56, %57 : vector<1x32xf32>
    %c0_40 = arith.constant 0 : index
    %c0_41 = arith.constant 0 : index
    %59 = vector.load %arg10[%c0_40, %c0_41] : memref<128x64xf32, #tpu.memory_space<vmem>>, vector<32x64xf32>
    %cst_42 = arith.constant dense<0.000000e+00> : vector<1x64xf32>
    %60 = tpu.matmul %58, %59, %cst_42 {dimension_numbers = #tpu.dot_dimension_numbers<[1], [0], [0], [1], [0, 0, 1, 1], [], []>} : vector<1x32xf32>, vector<32x64xf32>, vector<1x64xf32> -> vector<1x64xf32>
    %61 = arith.addf %32, %60 : vector<1x64xf32>
    %62 = vector.extract_strided_slice %13 {offsets = [0, 32], sizes = [1, 32], strides = [1, 1]} : vector<1x128xf32> to vector<1x32xf32>
    %cst_43 = arith.constant 0.176776692 : f32
    %63 = vector.broadcast %cst_43 : f32 to vector<1x32xf32>
    %64 = arith.mulf %62, %63 : vector<1x32xf32>
    %65 = vector.extract_strided_slice %17 {offsets = [0, 32], sizes = [1, 32], strides = [1, 1]} : vector<1x128xf32> to vector<1x32xf32>
    %cst_44 = arith.constant dense<0.000000e+00> : vector<1x1xf32>
    %66 = tpu.matmul %64, %65, %cst_44 {dimension_numbers = #tpu.dot_dimension_numbers<[1], [1], [0], [0], [0, 0, 1, 0], [], []>} : vector<1x32xf32>, vector<1x32xf32>, vector<1x1xf32> -> vector<1x1xf32>
    %67 = vector.extract_strided_slice %22 {offsets = [0, 32], sizes = [64, 32], strides = [1, 1]} : vector<64x128xf32> to vector<64x32xf32>
    %cst_45 = arith.constant dense<0.000000e+00> : vector<1x64xf32>
    %68 = tpu.matmul %64, %67, %cst_45 {dimension_numbers = #tpu.dot_dimension_numbers<[1], [1], [0], [0], [0, 0, 1, 0], [], []>} : vector<1x32xf32>, vector<64x32xf32>, vector<1x64xf32> -> vector<1x64xf32>
    %cst_46 = arith.constant dense<0xFF800000> : vector<1xf32>
    %69 = vector.multi_reduction <maximumf>, %68, %cst_46 [1] : vector<1x64xf32> to vector<1xf32>
    %70 = vector.shape_cast %69 : vector<1xf32> to vector<1x1xf32>
    %71 = arith.maximumf %70, %66 : vector<1x1xf32>
    %72 = arith.subf %66, %71 : vector<1x1xf32>
    %73 = math.exp %72 : vector<1x1xf32>
    %74 = vector.broadcast %71 : vector<1x1xf32> to vector<1x64xf32>
    %75 = arith.subf %68, %74 : vector<1x64xf32>
    %76 = math.exp %75 : vector<1x64xf32>
    %cst_47 = arith.constant dense<0.000000e+00> : vector<1xf32>
    %77 = vector.multi_reduction <add>, %76, %cst_47 [1] : vector<1x64xf32> to vector<1xf32>
    %78 = vector.shape_cast %77 : vector<1xf32> to vector<1x1xf32>
    %79 = arith.addf %73, %78 : vector<1x1xf32>
    %80 = vector.extract_strided_slice %26 {offsets = [0, 32], sizes = [1, 32], strides = [1, 1]} : vector<1x128xf32> to vector<1x32xf32>
    %81 = vector.broadcast %73 : vector<1x1xf32> to vector<1x32xf32>
    %82 = arith.mulf %81, %80 : vector<1x32xf32>
    %83 = vector.extract_strided_slice %31 {offsets = [0, 32], sizes = [64, 32], strides = [1, 1]} : vector<64x128xf32> to vector<64x32xf32>
    %cst_48 = arith.constant dense<0.000000e+00> : vector<1x32xf32>
    %84 = tpu.matmul %76, %83, %cst_48 {dimension_numbers = #tpu.dot_dimension_numbers<[1], [0], [0], [1], [0, 0, 1, 1], [], []>} : vector<1x64xf32>, vector<64x32xf32>, vector<1x32xf32> -> vector<1x32xf32>
    %85 = arith.addf %82, %84 : vector<1x32xf32>
    %86 = vector.broadcast %79 : vector<1x1xf32> to vector<1x32xf32>
    %87 = arith.divf %85, %86 : vector<1x32xf32>
    %c32 = arith.constant 32 : index
    %c0_49 = arith.constant 0 : index
    %88 = vector.load %arg10[%c32, %c0_49] : memref<128x64xf32, #tpu.memory_space<vmem>>, vector<32x64xf32>
    %cst_50 = arith.constant dense<0.000000e+00> : vector<1x64xf32>
    %89 = tpu.matmul %87, %88, %cst_50 {dimension_numbers = #tpu.dot_dimension_numbers<[1], [0], [0], [1], [0, 0, 1, 1], [], []>} : vector<1x32xf32>, vector<32x64xf32>, vector<1x64xf32> -> vector<1x64xf32>
    %90 = arith.addf %61, %89 : vector<1x64xf32>
    %91 = vector.extract_strided_slice %13 {offsets = [0, 64], sizes = [1, 32], strides = [1, 1]} : vector<1x128xf32> to vector<1x32xf32>
    %cst_51 = arith.constant 0.176776692 : f32
    %92 = vector.broadcast %cst_51 : f32 to vector<1x32xf32>
    %93 = arith.mulf %91, %92 : vector<1x32xf32>
    %94 = vector.extract_strided_slice %17 {offsets = [0, 64], sizes = [1, 32], strides = [1, 1]} : vector<1x128xf32> to vector<1x32xf32>
    %cst_52 = arith.constant dense<0.000000e+00> : vector<1x1xf32>
    %95 = tpu.matmul %93, %94, %cst_52 {dimension_numbers = #tpu.dot_dimension_numbers<[1], [1], [0], [0], [0, 0, 1, 0], [], []>} : vector<1x32xf32>, vector<1x32xf32>, vector<1x1xf32> -> vector<1x1xf32>
    %96 = vector.extract_strided_slice %22 {offsets = [0, 64], sizes = [64, 32], strides = [1, 1]} : vector<64x128xf32> to vector<64x32xf32>
    %cst_53 = arith.constant dense<0.000000e+00> : vector<1x64xf32>
    %97 = tpu.matmul %93, %96, %cst_53 {dimension_numbers = #tpu.dot_dimension_numbers<[1], [1], [0], [0], [0, 0, 1, 0], [], []>} : vector<1x32xf32>, vector<64x32xf32>, vector<1x64xf32> -> vector<1x64xf32>
    %cst_54 = arith.constant dense<0xFF800000> : vector<1xf32>
    %98 = vector.multi_reduction <maximumf>, %97, %cst_54 [1] : vector<1x64xf32> to vector<1xf32>
    %99 = vector.shape_cast %98 : vector<1xf32> to vector<1x1xf32>
    %100 = arith.maximumf %99, %95 : vector<1x1xf32>
    %101 = arith.subf %95, %100 : vector<1x1xf32>
    %102 = math.exp %101 : vector<1x1xf32>
    %103 = vector.broadcast %100 : vector<1x1xf32> to vector<1x64xf32>
    %104 = arith.subf %97, %103 : vector<1x64xf32>
    %105 = math.exp %104 : vector<1x64xf32>
    %cst_55 = arith.constant dense<0.000000e+00> : vector<1xf32>
    %106 = vector.multi_reduction <add>, %105, %cst_55 [1] : vector<1x64xf32> to vector<1xf32>
    %107 = vector.shape_cast %106 : vector<1xf32> to vector<1x1xf32>
    %108 = arith.addf %102, %107 : vector<1x1xf32>
    %109 = vector.extract_strided_slice %26 {offsets = [0, 64], sizes = [1, 32], strides = [1, 1]} : vector<1x128xf32> to vector<1x32xf32>
    %110 = vector.broadcast %102 : vector<1x1xf32> to vector<1x32xf32>
    %111 = arith.mulf %110, %109 : vector<1x32xf32>
    %112 = vector.extract_strided_slice %31 {offsets = [0, 64], sizes = [64, 32], strides = [1, 1]} : vector<64x128xf32> to vector<64x32xf32>
    %cst_56 = arith.constant dense<0.000000e+00> : vector<1x32xf32>
    %113 = tpu.matmul %105, %112, %cst_56 {dimension_numbers = #tpu.dot_dimension_numbers<[1], [0], [0], [1], [0, 0, 1, 1], [], []>} : vector<1x64xf32>, vector<64x32xf32>, vector<1x32xf32> -> vector<1x32xf32>
    %114 = arith.addf %111, %113 : vector<1x32xf32>
    %115 = vector.broadcast %108 : vector<1x1xf32> to vector<1x32xf32>
    %116 = arith.divf %114, %115 : vector<1x32xf32>
    %c64 = arith.constant 64 : index
    %c0_57 = arith.constant 0 : index
    %117 = vector.load %arg10[%c64, %c0_57] : memref<128x64xf32, #tpu.memory_space<vmem>>, vector<32x64xf32>
    %cst_58 = arith.constant dense<0.000000e+00> : vector<1x64xf32>
    %118 = tpu.matmul %116, %117, %cst_58 {dimension_numbers = #tpu.dot_dimension_numbers<[1], [0], [0], [1], [0, 0, 1, 1], [], []>} : vector<1x32xf32>, vector<32x64xf32>, vector<1x64xf32> -> vector<1x64xf32>
    %119 = arith.addf %90, %118 : vector<1x64xf32>
    %120 = vector.extract_strided_slice %13 {offsets = [0, 96], sizes = [1, 32], strides = [1, 1]} : vector<1x128xf32> to vector<1x32xf32>
    %cst_59 = arith.constant 0.176776692 : f32
    %121 = vector.broadcast %cst_59 : f32 to vector<1x32xf32>
    %122 = arith.mulf %120, %121 : vector<1x32xf32>
    %123 = vector.extract_strided_slice %17 {offsets = [0, 96], sizes = [1, 32], strides = [1, 1]} : vector<1x128xf32> to vector<1x32xf32>
    %cst_60 = arith.constant dense<0.000000e+00> : vector<1x1xf32>
    %124 = tpu.matmul %122, %123, %cst_60 {dimension_numbers = #tpu.dot_dimension_numbers<[1], [1], [0], [0], [0, 0, 1, 0], [], []>} : vector<1x32xf32>, vector<1x32xf32>, vector<1x1xf32> -> vector<1x1xf32>
    %125 = vector.extract_strided_slice %22 {offsets = [0, 96], sizes = [64, 32], strides = [1, 1]} : vector<64x128xf32> to vector<64x32xf32>
    %cst_61 = arith.constant dense<0.000000e+00> : vector<1x64xf32>
    %126 = tpu.matmul %122, %125, %cst_61 {dimension_numbers = #tpu.dot_dimension_numbers<[1], [1], [0], [0], [0, 0, 1, 0], [], []>} : vector<1x32xf32>, vector<64x32xf32>, vector<1x64xf32> -> vector<1x64xf32>
    %cst_62 = arith.constant dense<0xFF800000> : vector<1xf32>
    %127 = vector.multi_reduction <maximumf>, %126, %cst_62 [1] : vector<1x64xf32> to vector<1xf32>
    %128 = vector.shape_cast %127 : vector<1xf32> to vector<1x1xf32>
    %129 = arith.maximumf %128, %124 : vector<1x1xf32>
    %130 = arith.subf %124, %129 : vector<1x1xf32>
    %131 = math.exp %130 : vector<1x1xf32>
    %132 = vector.broadcast %129 : vector<1x1xf32> to vector<1x64xf32>
    %133 = arith.subf %126, %132 : vector<1x64xf32>
    %134 = math.exp %133 : vector<1x64xf32>
    %cst_63 = arith.constant dense<0.000000e+00> : vector<1xf32>
    %135 = vector.multi_reduction <add>, %134, %cst_63 [1] : vector<1x64xf32> to vector<1xf32>
    %136 = vector.shape_cast %135 : vector<1xf32> to vector<1x1xf32>
    %137 = arith.addf %131, %136 : vector<1x1xf32>
    %138 = vector.extract_strided_slice %26 {offsets = [0, 96], sizes = [1, 32], strides = [1, 1]} : vector<1x128xf32> to vector<1x32xf32>
    %139 = vector.broadcast %131 : vector<1x1xf32> to vector<1x32xf32>
    %140 = arith.mulf %139, %138 : vector<1x32xf32>
    %141 = vector.extract_strided_slice %31 {offsets = [0, 96], sizes = [64, 32], strides = [1, 1]} : vector<64x128xf32> to vector<64x32xf32>
    %cst_64 = arith.constant dense<0.000000e+00> : vector<1x32xf32>
    %142 = tpu.matmul %134, %141, %cst_64 {dimension_numbers = #tpu.dot_dimension_numbers<[1], [0], [0], [1], [0, 0, 1, 1], [], []>} : vector<1x64xf32>, vector<64x32xf32>, vector<1x32xf32> -> vector<1x32xf32>
    %143 = arith.addf %140, %142 : vector<1x32xf32>
    %144 = vector.broadcast %137 : vector<1x1xf32> to vector<1x32xf32>
    %145 = arith.divf %143, %144 : vector<1x32xf32>
    %c96 = arith.constant 96 : index
    %c0_65 = arith.constant 0 : index
    %146 = vector.load %arg10[%c96, %c0_65] : memref<128x64xf32, #tpu.memory_space<vmem>>, vector<32x64xf32>
    %cst_66 = arith.constant dense<0.000000e+00> : vector<1x64xf32>
    %147 = tpu.matmul %145, %146, %cst_66 {dimension_numbers = #tpu.dot_dimension_numbers<[1], [0], [0], [1], [0, 0, 1, 1], [], []>} : vector<1x32xf32>, vector<32x64xf32>, vector<1x64xf32> -> vector<1x64xf32>
    %148 = arith.addf %119, %147 : vector<1x64xf32>
    %c0_67 = arith.constant 0 : index
    %c0_68 = arith.constant 0 : index
    %c0_69 = arith.constant 0 : index
    %149 = vector.load %arg12[%c0_67, %c0_68, %c0_69] : memref<1x1x64xf32, #tpu.memory_space<vmem>>, vector<1x1x64xf32>
    %150 = vector.shape_cast %149 : vector<1x1x64xf32> to vector<1x64xf32>
    %151 = vector.shape_cast %148 : vector<1x64xf32> to vector<1x1x64xf32>
    tpu.vector_store %arg12[%c0_67, %c0_68, %c0_69], %151 {strides = array<i32>} : memref<1x1x64xf32, #tpu.memory_space<vmem>>, vector<1x1x64xf32>,
    return
  }
  func.func @transform_0(%arg0: i32) -> (i32, i32, i32) {
    %c0_i32 = arith.constant 0 : i32
    %c0_i32_0 = arith.constant 0 : i32
    %c0_i32_1 = arith.constant 0 : i32
    return %arg0, %c0_i32, %c0_i32_0 : i32, i32, i32
  }
  func.func @transform_1(%arg0: i32) -> (i32, i32) {
    %c0_i32 = arith.constant 0 : i32
    %c0_i32_0 = arith.constant 0 : i32
    %c0_i32_1 = arith.constant 0 : i32
    return %c0_i32, %c0_i32_0 : i32, i32
  }
  func.func @transform_2(%arg0: i32) -> (i32, i32) {
    %c0_i32 = arith.constant 0 : i32
    %c0_i32_0 = arith.constant 0 : i32
    %c0_i32_1 = arith.constant 0 : i32
    return %c0_i32, %c0_i32_0 : i32, i32
  }
  func.func @transform_3(%arg0: i32) -> (i32, i32) {
    %c0_i32 = arith.constant 0 : i32
    %c0_i32_0 = arith.constant 0 : i32
    %c0_i32_1 = arith.constant 0 : i32
    return %c0_i32, %c0_i32_0 : i32, i32
  }
  func.func @transform_4(%arg0: i32) -> (i32, i32) {
    %c0_i32 = arith.constant 0 : i32
    %c0_i32_0 = arith.constant 0 : i32
    %c0_i32_1 = arith.constant 0 : i32
    return %c0_i32, %c0_i32_0 : i32, i32
  }
  func.func @transform_5(%arg0: i32) -> (i32, i32) {
    %c0_i32 = arith.constant 0 : i32
    %c0_i32_0 = arith.constant 0 : i32
    %c0_i32_1 = arith.constant 0 : i32
    return %c0_i32, %c0_i32_0 : i32, i32
  }
  func.func @transform_6(%arg0: i32) -> (i32, i32) {
    %c0_i32 = arith.constant 0 : i32
    %c0_i32_0 = arith.constant 0 : i32
    %c0_i32_1 = arith.constant 0 : i32
    return %c0_i32, %c0_i32_0 : i32, i32
  }
  func.func @transform_7(%arg0: i32) -> (i32, i32) {
    %c0_i32 = arith.constant 0 : i32
    %c0_i32_0 = arith.constant 0 : i32
    %c0_i32_1 = arith.constant 0 : i32
    return %c0_i32, %c0_i32_0 : i32, i32
  }
  func.func @transform_8(%arg0: i32) -> (i32, i32) {
    %c0_i32 = arith.constant 0 : i32
    %c0_i32_0 = arith.constant 0 : i32
    %c0_i32_1 = arith.constant 0 : i32
    return %c0_i32, %c0_i32_0 : i32, i32
  }
  func.func @transform_9(%arg0: i32) -> (i32, i32) {
    %c0_i32 = arith.constant 0 : i32
    %c0_i32_0 = arith.constant 0 : i32
    %c0_i32_1 = arith.constant 0 : i32
    return %c0_i32, %c0_i32_0 : i32, i32
  }
  func.func @transform_10(%arg0: i32) -> (i32, i32) {
    %c0_i32 = arith.constant 0 : i32
    %c0_i32_0 = arith.constant 0 : i32
    %c0_i32_1 = arith.constant 0 : i32
    return %c0_i32, %c0_i32_0 : i32, i32
  }
  func.func @transform_11(%arg0: i32) -> (i32, i32, i32) {
    %c0_i32 = arith.constant 0 : i32
    %c0_i32_0 = arith.constant 0 : i32
    %c0_i32_1 = arith.constant 0 : i32
    return %arg0, %c0_i32, %c0_i32_0 : i32, i32, i32
  }
}

</mosaic_0001>

<bundles_post_ra>
// kernel: tpu_custom_call.1
= control target key start
LH: loop header
LB: loop body
LE: loop exit
PB: predicated region body
PF: predicated region fallthrough
CT: control target
= control target key end

     0   :  { %s4317_s0 = inlined_call_operand.vmem [shape: f32[2,64,128], index: 0, kind: input, shape index: {}]   ;;  %s4318_s1 = inlined_call_operand.vmem [shape: f32[1,128], index: 1, kind: input, shape index: {}]   ;;  %s4319_s2 = inlined_call_operand.vmem [shape: f32[64,128], index: 2, kind: input, shape index: {}]   ;;  %s4320_s3 = inlined_call_operand.hbm [shape: f32[128,128], index: 3, kind: input, shape index: {}]   ;;  %s4321_s4 = inlined_call_operand.vmem [shape: f32[1,128], index: 4, kind: input, shape index: {}]   ;;  %s4322_s5 = inlined_call_operand.hbm [shape: f32[128,128], index: 5, kind: input, shape index: {}]   ;;  %s4323_s6 = inlined_call_operand.vmem [shape: f32[1,128], index: 6, kind: input, shape index: {}]   ;;  %s4324_s7 = inlined_call_operand.hbm [shape: f32[128,128], index: 7, kind: input, shape index: {}]   ;;  %s4325_s8 = inlined_call_operand.vmem [shape: f32[1,128], index: 8, kind: input, shape index: {}]   ;;  %s4326_s9 = inlined_call_operand.vmem [shape: f32[128,64], index: 9, kind: input, shape index: {}]   ;;  %s4327_s10 = inlined_call_operand.vmem [shape: f32[1,64], index: 10, kind: input, shape index: {}]   ;;  %s4328_s11 = inlined_call_operand.hbm [shape: f32[2,1,64], index: 11, kind: output, shape index: {}]  }
   0x1   :  { %4339 = sst [smem:[#allocation18_spill]] %s4328_s11 }
   0x2   :  { %16 = vsyncpa [#allocation3], 0 }
   0x3   :  { %17 = vsyncpa [#allocation6], 0 }
   0x4   :  { %18 = vsyncpa [#allocation4], 0 }
   0x5   :  { %20 = vsyncpa [#allocation4 + $0x1], 0  ;;  %s3639_s17 = smov 0   ;;  %s3641_s18 = smov 0  }
   0x6   :  { %s3643_s19 = smov 0   ;;  %s3645_s20 = smov 0  }
   0x7 LB: > { %4340 = sst [smem:[#allocation12_spill]] %s3553_s17  ;;  %s3660_s21 = sadd.s32 4294967295, %s3565_s20   ;;  %s3565_s20 = sphi %s3645_s20, %s4364_s20   ;;  %s3561_s19 = sphi %s3643_s19, %s4366_s19   ;;  %s3557_s18 = sphi %s3641_s18, %s4368_s18   ;;  %s3553_s17 = sphi %s3639_s17, %s4367_s17  }
   0x8   : > { %4341 = sst [smem:[#allocation13_spill]] %s3561_s19  ;;  %s2270_s22 = sadd.s32 4294967294, %s3565_s20  }
   0x9   : > { %4342 = sst [smem:[#allocation14_spill]] %s3565_s20  ;;  %s3664_s23 = sadd.s32 1, %s3565_s20  }
   0xa   : > { %4343 = sst [smem:[#allocation15_spill]] %s3664_s23  ;;  %s269_s24 = sadd.s32 1, %s3561_s19 }
   0xb   : > { %s266_s25 = ssub.s32 %s3565_s20, %s3664_s23  ;;  %p279_p0 = scmp.ne.s32.totalorder %s3561_s19, %s3557_s18 }
   0xc   : > { %p267_p1 = scmp.eq.s32.totalorder %s266_s25, 0  ;;  %p280_p2 = scmp.eq.s32.totalorder %s3660_s21, 1 }
   0xd   : > { %p285_p3 = scmp.ne.s32.totalorder %s3557_s18, %s3553_s17  ;;  %p286_p4 = scmp.eq.s32.totalorder %s2270_s22, 1 }
   0xe   : > { %s3675_s26 = scalar_select %p267_p1, %s3561_s19, %s269_s24  }
   0xf   : > { %p3677_p5 = por %p280_p2, %p279_p0  ;;  %p3681_p6 = por %p286_p4, %p285_p3 }
  0x10   : > { %4344 = sst [smem:[#allocation16_spill]] %s3675_s26  ;;  %p2271_p7 = scmp.ge.s32.totalorder %s3565_s20, 1 }
  0x11   : > { %s4345_s27 = scalar_select %p3677_p5, 1, 0 }
  0x12   : > { %s4346_s28 = scalar_select %p3681_p6, 1, 0 }
  0x13   : > { %p293_p8 = scmp.lt.s32.totalorder %s3565_s20, 3  ;;  %p4332_p9 = scmp.eq.s32.totalorder %s3660_s21, 0 }
  0x14   : > { %4347 = sst [smem:[#allocation17_spill]] %s4346_s28  ;;  %s3567_s30 = smov [#allocation5]  }
  0x15   : > { %p3688_p10 = pnand %p2271_p7, %p293_p8  ;;  %s327_s12 = sshll.u32 %s3567_s30, 4  ;;  %s3694_s12 = int_to_ptr.vmem [resolvable:$true] %s327_s12 }
  0x16   : > { %s3568_s14 = smov [#allocation2]   ;;  %s3569_s16 = smov [#allocation7]  }
  0x17   : > { %s4348_s29 = scalar_select %p3688_p10, 1, 0 }
  0x18   : > { %p3203_p11 = pneg %p3688_p10  ;;  %s311_s15 = sshll.u32 %s3568_s14, 4  ;;  %s3702_s15 = int_to_ptr.vmem [resolvable:$true] %s311_s15 }
  0x19   : > { %s3704_s22 = sshll.u32 %s3569_s16, 4  ;;  %s3411_s26 = scalar_lea.hbm %s4322_s5, 2048  ;;  %s344_s22 = int_to_ptr.vmem [resolvable:$true] %s3704_s22 }
  0x1a   : > { %p3698_p12 = pnand %p4332_p9, %p3203_p11  ;;  %p3412_p13 = scmp.ne.s32.totalorder %s4322_s5, %s3411_s26 }
  0x1b   : > { %p3418_p3 = scmp.lt.u32.totalorder %s3411_s26, %s4322_s5 }
  0x1c   : > { %p3714_p0 = pneg %p3698_p12 }
  0x1e   : > { %p3414_p1 = pnand %p3714_p0, %p3412_p13 }
  0x20   : > { %p3415_p2 = pneg %p3414_p1 }
  0x22   : > { %p3420_p4 = pnand %p3418_p3, %p3415_p2 }
  0x24   : > { %3423 = shalt.err (!%p3420_p4)
}
  0x25   : > { %s3424_s19 = scalar_lea.vmem %s3694_s12, 2048  ;;  %p3432_p9 = scmp.lt.s32.totalorder %s3694_s12, %s3694_s12 }
  0x26   : > { %p3425_p7 = scmp.ne.s32.totalorder %s3694_s12, %s3424_s19  ;;  %p3433_p6 = scmp.lt.s32.totalorder %s3424_s19, %s3424_s19 }
  0x28   : > { %p3427_p8 = pnand %p3425_p7, %p3714_p0  ;;  %p3434_p13 = por %p3433_p6, %p3432_p9 }
  0x2a   : > { %p3428_p11 = pneg %p3427_p8 }
  0x2c   : > { %p3435_p1 = pnand %p3434_p13, %p3428_p11 }
  0x2e   : > { %3438 = shalt.err (!%p3435_p1)
}
  0x2f   : > { %s3570_s24 = smov 128   ;;  %s3571_s26 = smov 8  }
  0x30   : > { %3209 = dma.hbm_to_vmem [thread:$0]  (!%p3698_p12), %s4322_s5, 2048, %s3694_s12, [#allocation6], %s3570_s24, %s3570_s24, %s3571_s26  }
  0x31   : > { %s3439_s19 = scalar_lea.hbm %s4320_s3, 2048 }
  0x32   : > { %p3440_p6 = scmp.ne.s32.totalorder %s4320_s3, %s3439_s19  ;;  %p3446_p3 = scmp.lt.u32.totalorder %s3439_s19, %s4320_s3 }
  0x34   : > { %p3442_p9 = pnand %p3440_p6, %p3714_p0 }
  0x36   : > { %p3443_p2 = pneg %p3442_p9 }
  0x38   : > { %p3448_p4 = pnand %p3446_p3, %p3443_p2 }
  0x3a   : > { %3451 = shalt.err (!%p3448_p4)
}
  0x3b   : > { %s3452_s12 = scalar_lea.vmem %s3702_s15, 2048  ;;  %p3460_p13 = scmp.lt.s32.totalorder %s3702_s15, %s3702_s15 }
  0x3c   : > { %p3453_p7 = scmp.ne.s32.totalorder %s3702_s15, %s3452_s12  ;;  %p3461_p1 = scmp.lt.s32.totalorder %s3452_s12, %s3452_s12 }
  0x3e   : > { %p3455_p8 = pnand %p3453_p7, %p3714_p0  ;;  %p3462_p6 = por %p3461_p1, %p3460_p13 }
  0x40   : > { %p3456_p11 = pneg %p3455_p8 }
  0x42   : > { %p3463_p9 = pnand %p3462_p6, %p3456_p11 }
  0x44   : > { %3466 = shalt.err (!%p3463_p9)
}
  0x45   : > { %3206 = dma.hbm_to_vmem [thread:$0]  (!%p3698_p12), %s4320_s3, 2048, %s3702_s15, [#allocation3], %s3570_s24, %s3570_s24, %s3571_s26  }
  0x46   : > { %s3467_s25 = scalar_lea.hbm %s4324_s7, 2048 }
  0x47   : > { %p3468_p2 = scmp.ne.s32.totalorder %s4324_s7, %s3467_s25  ;;  %p3474_p7 = scmp.lt.u32.totalorder %s3467_s25, %s4324_s7 }
  0x49   : > { %p3470_p3 = pnand %p3468_p2, %p3714_p0 }
  0x4b   : > { %p3471_p4 = pneg %p3470_p3 }
  0x4d   : > { %p3476_p8 = pnand %p3474_p7, %p3471_p4 }
  0x4f   : > { %3479 = shalt.err (!%p3476_p8)
}
  0x50   : > { %s3480_s12 = scalar_lea.vmem %s344_s22, 2048  ;;  %p3488_p6 = scmp.lt.s32.totalorder %s344_s22, %s344_s22 }
  0x51   : > { %p3481_p11 = scmp.ne.s32.totalorder %s344_s22, %s3480_s12  ;;  %p3489_p9 = scmp.lt.s32.totalorder %s3480_s12, %s3480_s12 }
  0x53   : > { %p3483_p13 = pnand %p3481_p11, %p3714_p0  ;;  %p3490_p5 = por %p3489_p9, %p3488_p6 }
  0x55   : > { %p3484_p1 = pneg %p3483_p13 }
  0x57   : > { %p3491_p10 = pnand %p3490_p5, %p3484_p1 }
  0x59   : > { %3494 = shalt.err (!%p3491_p10)
}
  0x5a   : > { %3212 = dma.hbm_to_vmem [thread:$0]  (!%p3698_p12), %s4324_s7, 2048, %s344_s22, [#allocation6], %s3570_s24, %s3570_s24, %s3571_s26  }
  0x5b   : > { %p4351_p2 = scmp.ne.s32.totalorder %s4348_s29, 0 }
  0x5c   : > { %p4352_p0 = scmp.eq.s32.totalorder (!%p4351_p2), %s3660_s21, 0 }
  0x5d   : > { %376 = sbr.rel (%p4351_p2) target bundleno = 3014 (0xbc6), region = 64 }
  0x64   : > { %3540 = dma.done.wait (%p4352_p0), [#allocation3], 2048   ;;  %p4353_p3 = pmov %p4352_p0 }
  0x65   : > { %p4354_p5 = pmov %p4352_p0 }
  0x66   : > { %3542 = vsyncadd (%p4353_p3), [#allocation3], 4294965248 }
  0x67   : > { %3544 = dma.done.wait (%p4354_p5), [#allocation6], 4096   ;;  %p4355_p10 = pmov %p4352_p0 }
  0x68   : > { %v3572_v0 = vmov 0.0|0.0   ;;  %vm3573_vm0 = vmmov 0   ;;  %v3574_v1 = vmov 0.0   ;;  %p423_p12 = scmp.lt.s32.totalorder %s3660_s21, 1  ;;  %v469_v2 = vld [vmem:[#allocation2] sm:$0xff]  ;;  %v470_v3 = vld [vmem:[#allocation2 + $0x8] sm:$0xff] }
  0x69   : > { %3546 = vsyncadd (%p4355_p10), [#allocation6], 4294963200  ;;  %2910 = vmatprep.subr.bf16.mxu0 %v3572_v0  ;;  %2934 = vmatprep.subr.bf16.mxu1 %v3572_v0  ;;  %v556_v4 = vld [vmem:[#allocation5] sm:$0xff]  ;;  %v2911_v5 = vpack.c.bf16 %v470_v3, %v469_v2  ;;  %v557_v6 = vld [vmem:[#allocation5 + $0x8] sm:$0xff]  ;;  %vm955_vm1 = vcmask 253952   ;;  %vm959_vm2 = vcmask 261120  }
  0x6a   : > { %2553 = vmatprep.mubr.msk.f32.mxu0 %vm3573_vm0, %v3574_v1  ;;  %2588 = vmatprep.mubr.msk.f32.mxu1 %vm3573_vm0, %v3574_v1  ;;  %s424_s23 = scalar_select %p423_p12, %s3660_s21, 1  ;;  %v471_v7 = vld [vmem:[#allocation2 + $0x10] sm:$0xff]  ;;  %v472_v8 = vld [vmem:[#allocation2 + $0x18] sm:$0xff]  ;;  %v3804_v9 = vpack.c.bf16 %v557_v6, %v556_v4  ;;  %v473_v14 = vld [vmem:[#allocation2 + $0x20] sm:$0xff]  ;;  %vm1057_vm4 = vcmask 516096   ;;  %vm1073_vm5 = vcmask 523264  }
  0x6b   : > { %v558_v10 = vld [vmem:[#allocation5 + $0x10] sm:$0xff]  ;;  %v559_v11 = vld [vmem:[#allocation5 + $0x18] sm:$0xff]  ;;  %2912 = vmatpush3.bf16.msra.mxu0 %v2911_v5  ;;  %v2914_v12 = vpack.c.bf16 %v472_v8, %v471_v7  ;;  %v474_v15 = vld [vmem:[#allocation2 + $0x28] sm:$0xff]  ;;  %s3575_s16 = smov 96   ;;  %s3577_s26 = smov 32  }
  0x6c   : > { %2913 = vmatprep.subr.bf16.mxu0 %v3572_v0  ;;  %2936 = vmatpush3.bf16.msra.mxu1 %v3804_v9  ;;  %v3808_v13 = vpack.c.bf16 %v559_v11, %v558_v10  ;;  %s2329_s29 = sshll.u32 %s424_s23, 6  ;;  %v560_v16 = vld [vmem:[#allocation5 + $0x20] sm:$0xff]  ;;  %v561_v17 = vld [vmem:[#allocation5 + $0x28] sm:$0xff]  ;;  %v2917_v18 = vpack.c.bf16 %v474_v15, %v473_v14  ;;  %v475_v20 = vld [vmem:[#allocation2 + $0x30] sm:$0xff]  ;;  %p4359_p7 = scmp.ne.s32.totalorder %s4345_s27, 0 }
  0x6d   : > { %2937 = vmatprep.subr.bf16.mxu1 %v3572_v0  ;;  %s3814_s24 = scalar_lea.vmem %s4317_s0, %s2329_s29  ;;  %v3818_v19 = vpack.c.bf16 %v561_v17, %v560_v16  ;;  %v476_v21 = vld [vmem:[#allocation2 + $0x38] sm:$0xff]  ;;  %v562_v22 = vld [vmem:[#allocation5 + $0x30] sm:$0xff]  ;;  %v477_v30 = vld [vmem:[#allocation2 + $0x40] sm:$0xff]  ;;  %s2326_s29 = sshll.u32 %s3660_s21, 4 }
  0x6e   : > { %v563_v23 = vld [vmem:[#allocation5 + $0x38] sm:$0xff]  ;;  %v3822_v24 = vld [vmem:[%s3814_s24] sm:$0xff]  ;;  %v3825_v25 = vld [vmem:[%s3814_s24 + $0x8] sm:$0xff]  ;;  %v2920_v27 = vpack.c.bf16 %v476_v21, %v475_v20  ;;  %s3578_s21 = smov [#allocation8]  }
  0x6f   : > { %2915 = vmatpush3.bf16.msra.mxu0 %v2914_v12  ;;  %v3828_v26 = vld [vmem:[%s3814_s24 + $0x10] sm:$0xff]  ;;  %v436_v28 = vadd.f32 %v3825_v25, %v3822_v24  ;;  %v3834_v29 = vpack.c.bf16 %v563_v23, %v562_v22  ;;  %v478_v31 = vld [vmem:[#allocation2 + $0x48] sm:$0xff]  ;;  %v3837_v32 = vld [vmem:[%s3814_s24 + $0x18] sm:$0xff]  ;;  %s3499_s30 = sshll.u32 %s3578_s21, 4  ;;  %s3500_s30 = int_to_ptr.vmem [resolvable:$false] %s3499_s30 }
  0x70   : > { %2916 = vmatprep.subr.bf16.mxu0 %v3572_v0  ;;  %2939 = vmatpush3.bf16.msra.mxu1 %v3808_v13  ;;  %v564_v33 = vld [vmem:[#allocation5 + $0x40] sm:$0xff]  ;;  %v565_v34 = vld [vmem:[#allocation5 + $0x48] sm:$0xff]  ;;  %v2923_v37 = vpack.c.bf16 %v478_v31, %v477_v30  ;;  %v479_v40 = vld [vmem:[#allocation2 + $0x50] sm:$0xff]  ;;  %s3501_s14 = scalar_lea.vmem %s3500_s30, 32 }
  0x71   : > { %2940 = vmatprep.subr.bf16.mxu1 %v3572_v0  ;;  %v437_v35 = vadd.f32 %v436_v28, %v3828_v26  ;;  %v3842_v36 = vld [vmem:[%s3814_s24 + $0x20] sm:$0xff]  ;;  %v3847_v39 = vpack.c.bf16 %v565_v34, %v564_v33  ;;  %v480_v41 = vld [vmem:[#allocation2 + $0x58] sm:$0xff]  ;;  %v3850_v42 = vld [vmem:[%s3814_s24 + $0x28] sm:$0xff] }
  0x72   : > { %v566_v43 = vld [vmem:[#allocation5 + $0x50] sm:$0xff]  ;;  %v567_v44 = vld [vmem:[#allocation5 + $0x58] sm:$0xff]  ;;  %v2926_v47 = vpack.c.bf16 %v480_v41, %v479_v40  ;;  %v481_v50 = vld [vmem:[#allocation2 + $0x60] sm:$0xff] }
  0x73   : > { %2918 = vmatpush3.bf16.msra.mxu0 %v2917_v18  ;;  %v438_v38 = vadd.f32 %v437_v35, %v3837_v32  ;;  %v3855_v46 = vld [vmem:[%s3814_s24 + $0x30] sm:$0xff]  ;;  %v2950_v49 = vpack.c.bf16 %v567_v44, %v566_v43  ;;  %v482_v51 = vld [vmem:[#allocation2 + $0x68] sm:$0xff]  ;;  %v3861_v52 = vld [vmem:[%s3814_s24 + $0x38] sm:$0xff]  ;;  %s3576_s24 = smov 64  }
  0x74   : > { %2919 = vmatprep.subr.bf16.mxu0 %v3572_v0  ;;  %2942 = vmatpush3.bf16.msra.mxu1 %v3818_v19  ;;  %v568_v53 = vld [vmem:[#allocation5 + $0x60] sm:$0xff]  ;;  %v569_v54 = vld [vmem:[#allocation5 + $0x68] sm:$0xff]  ;;  %v2929_v56 = vpack.c.bf16 %v482_v51, %v481_v50  ;;  %v483_v59 = vld [vmem:[#allocation2 + $0x70] sm:$0xff] }
  0x75   : > { %2943 = vmatprep.subr.bf16.mxu1 %v3572_v0  ;;  %v439_v45 = vadd.f32 %v438_v38, %v3842_v36  ;;  %v2953_v58 = vpack.c.bf16 %v569_v54, %v568_v53  ;;  %v484_v60 = vld [vmem:[#allocation2 + $0x78] sm:$0xff]  ;;  %v570_v62 = vld [vmem:[#allocation5 + $0x70] sm:$0xff]  ;;  %v453_v10 = vld [vmem:[%s4319_s2] sm:$0xff] }
  0x76   : > { %v571_v63 = vld [vmem:[#allocation5 + $0x78] sm:$0xff]  ;;  %v2932_v2 = vpack.c.bf16 %v484_v60, %v483_v59  ;;  %v451_v11 = vld [vmem:[%s4318_s1] sm:$0x1]  ;;  %v461_v14 = vadd.f32 %v453_v10, %v3822_v24  ;;  %v458_v22 = vld [vmem:[%s4319_s2 + $0x28] sm:$0xff] }
  0x77   : > { %2921 = vmatpush3.bf16.msra.mxu0 %v2920_v27  ;;  %v440_v48 = vadd.f32 %v439_v45, %v3850_v42  ;;  %v2956_v4 = vpack.c.bf16 %v571_v63, %v570_v62  ;;  %v456_v18 = vld [vmem:[%s4319_s2 + $0x18] sm:$0xff]  ;;  %v459_v23 = vld [vmem:[%s4319_s2 + $0x30] sm:$0xff]  ;;  %v3928_v24 = vadd.f32 %v458_v22, %v3850_v42  ;;  %v754_v28 = vld [vmem:[#allocation7] sm:$0xff]  ;;  %v644_v63 = vlaneseq }
  0x78   : > { %2922 = vmatprep.subr.bf16.mxu0 %v3572_v0  ;;  %2945 = vmatpush3.bf16.msra.mxu1 %v3834_v29  ;;  %v3914_v20 = vadd.f32 %v456_v18, %v3837_v32  ;;  %v756_v31 = vld [vmem:[#allocation7 + $0x10] sm:$0xff]  ;;  %v757_v32 = vld [vmem:[#allocation7 + $0x18] sm:$0xff]  ;;  %v758_v34 = vld [vmem:[#allocation7 + $0x20] sm:$0xff] }
  0x79   : > { %2946 = vmatprep.subr.bf16.mxu1 %v3572_v0  ;;  %v441_v55 = vadd.f32 %v440_v48, %v3855_v46  ;;  %v2994_v33 = vpack.c.bf16 %v757_v32, %v756_v31  ;;  %v759_v35 = vld [vmem:[#allocation7 + $0x28] sm:$0xff]  ;;  %v761_v38 = vld [vmem:[#allocation7 + $0x38] sm:$0xff]  ;;  %v762_v40 = vld [vmem:[#allocation7 + $0x40] sm:$0xff] }
  0x7a   : > { %v763_v41 = vld [vmem:[#allocation7 + $0x48] sm:$0xff]  ;;  %v764_v43 = vld [vmem:[#allocation7 + $0x50] sm:$0xff]  ;;  %v765_v44 = vld [vmem:[#allocation7 + $0x58] sm:$0xff] }
  0x7b   : > { %2924 = vmatpush3.bf16.msra.mxu0 %v2923_v37  ;;  %v442_v57 = vadd.f32 %v441_v55, %v3861_v52  ;;  %v760_v37 = vld [vmem:[#allocation7 + $0x30] sm:$0xff]  ;;  %v3003_v42 = vpack.c.bf16 %v763_v41, %v762_v40  ;;  %v3006_v45 = vpack.c.bf16 %v765_v44, %v764_v43  ;;  %v769_v50 = vld [vmem:[#allocation7 + $0x78] sm:$0xff]  ;;  %v572_v53 = vld [vmem:[%s4323_s6] sm:$0x1] }
  0x7c   : > { %2925 = vmatprep.subr.bf16.mxu0 %v3572_v0  ;;  %2948 = vmatpush3.bf16.msra.mxu1 %v3847_v39  ;;  %vm3979_vm3 = vmpackc.low %vm959_vm2, %vm959_vm2  ;;  %v1779_v10 = vld [vmem:[%s4326_s9 + $0x40] sm:$0xff] }
  0x7d   : > { %2949 = vmatprep.subr.bf16.mxu1 %v3572_v0  ;;  %v443_v61 = vrot.slane %v442_v57, 4 }
  0x7f   : > { %2927 = vmatpush3.bf16.msra.mxu0 %v2926_v47  ;;  %v444_v3 = vadd.f32 %v443_v61, %v442_v57  ;;  %v767_v47 = vld [vmem:[#allocation7 + $0x68] sm:$0xff] }
  0x80   : > { %2928 = vmatprep.subr.bf16.mxu0 %v3572_v0  ;;  %2951 = vmatpush3.bf16.msra.mxu1 %v2950_v49 }
  0x81   : > { %2952 = vmatprep.subr.bf16.mxu1 %v3572_v0  ;;  %v445_v5 = vrot.slane %v444_v3, 2 }
  0x83   : > { %2930 = vmatpush3.bf16.msra.mxu0 %v2929_v56  ;;  %v446_v6 = vadd.f32 %v445_v5, %v444_v3 }
  0x84   : > { %2931 = vmatprep.subr.bf16.mxu0 %v3572_v0  ;;  %2954 = vmatpush3.bf16.msra.mxu1 %v2953_v58 }
  0x85   : > { %2955 = vmatprep.subr.bf16.mxu1 %v3572_v0  ;;  %v447_v7 = vrot.slane %v446_v6, 1 }
  0x87   : > { %2933 = vmatpush3.bf16.msra.mxu0 %v2932_v2  ;;  %v448_v8 = vadd.f32 %v447_v7, %v446_v6  ;;  %v645_v2 = vshrl.u32 %v644_v63, 7 }
  0x88   : > { %2957 = vmatpush3.bf16.msra.mxu1 %v2956_v4  ;;  %2959 = vmatprep.subr.bf16.mxu0 %v3804_v9 }
  0x89   : > { %2990 = vmatprep.subr.bf16.mxu1 %v3572_v0  ;;  %v450_v12 = vmul.f32 0.015625, %v448_v8  ;;  %v646_v3 = vsub.s32 0, %v645_v2 }
  0x8b   : > { %v3879_v15 = vadd.f32 %v451_v11, %v450_v12 }
  0x8d   : > { %2554 = vmatmul.mubr.f32.vlgmr.msra.gmra.mrb[0].mxu0 %v3879_v15  ;;  %2589 = vmatmul.mubr.f32.vlgmr.msra.gmra.mrb[0].mxu1 %v3879_v15 }
  0x8e   : > { %2961 = vmatpush3.bf16.msra.mxu0 %v3804_v9  ;;  %2623 = vmatprep.mubr.f32.mxu0 %v461_v14  ;;  %v454_v9 = vld [vmem:[%s4319_s2 + $0x8] sm:$0xff] }
  0x8f   : > { %2963 = vmatprep.subr.bf16.mxu0 %v3808_v13  ;;  %2667 = vmatprep.mubr.msk.f32.mxu1 %vm3573_vm0, %v3574_v1  ;;  %v3901_v16 = vadd.f32 %v454_v9, %v3825_v25  ;;  %v3932_v25 = vadd.f32 %v459_v23, %v3855_v46  ;;  %v766_v46 = vld [vmem:[#allocation7 + $0x60] sm:$0xff] }
  0x90   : > { %v3009_v48 = vpack.c.bf16 %v767_v47, %v766_v46 }
  0x92   : > { %2965 = vmatpush3.bf16.msra.mxu0 %v3808_v13  ;;  %v455_v13 = vld [vmem:[%s4319_s2 + $0x10] sm:$0xff] }
  0x93   : > { %2967 = vmatprep.subr.bf16.mxu0 %v3818_v19  ;;  %v3904_v17 = vadd.f32 %v455_v13, %v3828_v26  ;;  %v460_v26 = vld [vmem:[%s4319_s2 + $0x38] sm:$0xff] }
  0x94   : > { %v3939_v27 = vadd.f32 %v460_v26, %v3861_v52  ;;  %v485_v52 = vld [vmem:[%s4321_s4] sm:$0x1] }
  0x96   : > { %2969 = vmatpush3.bf16.msra.mxu0 %v3818_v19  ;;  %v457_v19 = vld [vmem:[%s4319_s2 + $0x20] sm:$0xff] }
  0x97   : > { %2971 = vmatprep.subr.bf16.mxu0 %v3834_v29  ;;  %v3918_v21 = vadd.f32 %v457_v19, %v3842_v36  ;;  %v2997_v36 = vpack.c.bf16 %v759_v35, %v758_v34 }
  0x9a   : > { %2973 = vmatpush3.bf16.msra.mxu0 %v3834_v29  ;;  %v755_v29 = vld [vmem:[#allocation7 + $0x8] sm:$0xff] }
  0x9b   : > { %2975 = vmatprep.subr.bf16.mxu0 %v3847_v39  ;;  %v2991_v30 = vpack.c.bf16 %v755_v29, %v754_v28 }
  0x9d   : > { %2992 = vmatpush3.bf16.msra.mxu1 %v2991_v30 }
  0x9e   : > { %2977 = vmatpush3.bf16.msra.mxu0 %v3847_v39  ;;  %2993 = vmatprep.subr.bf16.mxu1 %v3572_v0  ;;  %v3000_v39 = vpack.c.bf16 %v761_v38, %v760_v37 }
  0x9f   : > { %2979 = vmatprep.subr.bf16.mxu0 %v2950_v49 }
  0xa1   : > { %2995 = vmatpush3.bf16.msra.mxu1 %v2994_v33 }
  0xa2   : > { %2981 = vmatpush3.bf16.msra.mxu0 %v2950_v49  ;;  %2996 = vmatprep.subr.bf16.mxu1 %v3572_v0  ;;  %v768_v49 = vld [vmem:[#allocation7 + $0x70] sm:$0xff] }
  0xa3   : > { %2983 = vmatprep.subr.bf16.mxu0 %v2953_v58  ;;  %v3012_v51 = vpack.c.bf16 %v769_v50, %v768_v49 }
  0xa5   : > { %2998 = vmatpush3.bf16.msra.mxu1 %v2997_v36 }
  0xa6   : > { %2985 = vmatpush3.bf16.msra.mxu0 %v2953_v58  ;;  %2999 = vmatprep.subr.bf16.mxu1 %v3572_v0 }
  0xa7   : > { %2987 = vmatprep.subr.bf16.mxu0 %v2956_v4 }
  0xa9   : > { %3001 = vmatpush3.bf16.msra.mxu1 %v3000_v39 }
  0xaa   : > { %2989 = vmatpush3.bf16.msra.mxu0 %v2956_v4  ;;  %3002 = vmatprep.subr.bf16.mxu1 %v3572_v0  ;;  %v647_v4 = vrot.slane %v572_v53, %v646_v3 }
  0xab   : > { %3015 = vmatprep.subr.bf16.mxu0 %v2991_v30 }
  0xad   : > { %2624 = vmatmul.mubr.f32.vlgmr.msra.gmra.mrb[2].mxu0 %v3901_v16  ;;  %3004 = vmatpush3.bf16.msra.mxu1 %v3003_v42 }
  0xae   : > { %2626 = vmatprep.mubr.f32.mxu0 %v3904_v17  ;;  %3017 = vmatpush3.bf16.msra.mxu0 %v2991_v30 }
  0xaf   : > { %3019 = vmatprep.subr.bf16.mxu0 %v2994_v33  ;;  %3005 = vmatprep.subr.bf16.mxu1 %v3572_v0 }
  0xb1   : > { %2627 = vmatmul.mubr.f32.gmra.mrb[4].mxu0 %v3914_v20  ;;  %3007 = vmatpush3.bf16.msra.mxu1 %v3006_v45 }
  0xb2   : > { %2629 = vmatprep.mubr.f32.mxu0 %v3918_v21  ;;  %3021 = vmatpush3.bf16.msra.mxu0 %v2994_v33 }
  0xb3   : > { %3023 = vmatprep.subr.bf16.mxu0 %v2997_v36  ;;  %3008 = vmatprep.subr.bf16.mxu1 %v3572_v0 }
  0xb5   : > { %2630 = vmatmul.mubr.f32.gmra.mrb[6].mxu0 %v3928_v24  ;;  %3010 = vmatpush3.bf16.msra.mxu1 %v3009_v48 }
  0xb6   : > { %2632 = vmatprep.mubr.f32.mxu0 %v3932_v25  ;;  %3025 = vmatpush3.bf16.msra.mxu0 %v2997_v36 }
  0xb7   : > { %3027 = vmatprep.subr.bf16.mxu0 %v3000_v39  ;;  %3011 = vmatprep.subr.bf16.mxu1 %v3572_v0 }
  0xb9   : > { %2633 = vmatmul.mubr.f32.gmra.mrb[8].mxu0 %v3939_v27  ;;  %3013 = vmatpush3.bf16.msra.mxu1 %v3012_v51 }
  0xba   : > { %2702 = vmatprep.mubr.f32.mxu0 %v461_v14  ;;  %3029 = vmatpush3.bf16.msra.mxu0 %v3000_v39  ;;  %v4013_v39 = vld [vmem:[%s4325_s8] sm:$0x1] }
  0xbb   : > { %3031 = vmatprep.subr.bf16.mxu0 %v3003_v42  ;;  %3046 = vmatprep.subr.bf16.mxu1 %v3572_v0  ;;  %v845_v40 = vrot.slane %v4013_v39, %v646_v3 }
  0xbc   : > { %2668 = vmatmul.mubr.f32.vlgmr.msra.gmra.mrb[2].mxu1 %v3879_v15 }
  0xbd   : > { %2730 = vmatprep.mubr.msk.f32.mxu1 %vm3573_vm0, %v3574_v1 }
  0xbe   : > { %3033 = vmatpush3.bf16.msra.mxu0 %v3003_v42 }
  0xbf   : > { %3035 = vmatprep.subr.bf16.mxu0 %v3006_v45 }
  0xc2   : > { %3037 = vmatpush3.bf16.msra.mxu0 %v3006_v45 }
  0xc3   : > { %3039 = vmatprep.subr.bf16.mxu0 %v3009_v48 }
  0xc6   : > { %3041 = vmatpush3.bf16.msra.mxu0 %v3009_v48 }
  0xc7   : > { %3043 = vmatprep.subr.bf16.mxu0 %v3012_v51 }
  0xca   : > { %3045 = vmatpush3.bf16.msra.mxu0 %v3012_v51 }
  0xcb   : > { %3062 = vmatprep.subr.bf16.mxu0 %v3572_v0 }
  0xcd   : > { %2703 = vmatmul.mubr.f32.vlgmr.msra.gmra.mrb[10].mxu0 %v3901_v16 }
  0xce   : > { %2705 = vmatprep.mubr.f32.mxu0 %v3904_v17 }
  0xd1   : > { %2706 = vmatmul.mubr.f32.gmra.mrb[12].mxu0 %v3914_v20 }
  0xd2   : > { %2708 = vmatprep.mubr.f32.mxu0 %v3918_v21 }
  0xd5   : > { %2709 = vmatmul.mubr.f32.gmra.mrb[14].mxu0 %v3928_v24 }
  0xd6   : > { %2711 = vmatprep.mubr.f32.mxu0 %v3932_v25 }
  0xd9   : > { %2712 = vmatmul.mubr.f32.gmra.mrb[16].mxu0 %v3939_v27 }
  0xda   : > { %2749 = vmatprep.mubr.msk.f32.mxu0 %vm3573_vm0, %v3574_v1 }
 0x160   : > { %v552_v54 = vpop.f32.mrb[0].mxu0  ;;  %v639_v55 = vpop.f32.mrb[0].mxu1 }
 0x161   : > { %v553_v56 = vadd.f32 %v552_v54, %v485_v52  ;;  %v2555_v57 = vpop.f32.mrb[1].mxu0  ;;  %v640_v58 = vadd.f32 %v639_v55, %v572_v53  ;;  %v2590_v59 = vpop.f32.mrb[1].mxu1 }
 0x163   : > { %v3970_v60 = vmul.f32 0.17677669, %v553_v56 }
 0x165   : > { %v3973_v61 = vmul.f32 %v3970_v60, %v640_v58 }
 0x167   : > { %v956_v62 = vsel %vm955_vm1, %v3973_v61, 0.0 }
 0x168   : > { %957 = vadd.xlane.f32.xlu0 %v956_v62 }
 0x180   : > { %v2625_v5 = vpop.f32.mrb[2].mxu0 }
 0x181   : > { %v721_v6 = vadd.f32 %v2625_v5, %v647_v4  ;;  %v715_v7 = vpop.f32.mrb[3].mxu0 }
 0x182   : > { %v716_v8 = vadd.f32 %v715_v7, %v647_v4 }
 0x184   : > { %v3047_v11 = vpack.c.bf16 %v721_v6, %v716_v8  ;;  %v2628_v12 = vpop.f32.mrb[4].mxu0  ;;  %v3983_v14 = vpack.i.bf16 %v721_v6, %v716_v8 }
 0x185   : > { %v731_v15 = vadd.f32 %v2628_v12, %v647_v4  ;;  %v725_v9 = vpop.f32.mrb[5].mxu0 }
 0x186   : > { %3049 = vmatpush3.bf16.xpose.msk.msra.mxu1 %vm3979_vm3, %v3047_v11  ;;  %v726_v13 = vadd.f32 %v725_v9, %v647_v4 }
 0x187   : > { %3050 = vmatprep.subr.bf16.mxu1 %v3572_v0 }
 0x188   : > { %v3051_v16 = vpack.c.bf16 %v731_v15, %v726_v13  ;;  %v2631_v17 = vpop.f32.mrb[6].mxu0  ;;  %v3988_v18 = vpack.i.bf16 %v731_v15, %v726_v13 }
 0x189   : > { %v741_v19 = vadd.f32 %v2631_v17, %v647_v4  ;;  %v735_v20 = vpop.f32.mrb[7].mxu0  ;;  %v1150_v17 = vld [vmem:[%s4326_s9] sm:$0xff] }
 0x18a   : > { %v736_v21 = vadd.f32 %v735_v20, %v647_v4  ;;  %v1152_v20 = vld [vmem:[%s4326_s9 + $0x10] sm:$0xff] }
 0x18c   : > { %v3055_v22 = vpack.c.bf16 %v741_v19, %v736_v21  ;;  %v2634_v23 = vpop.f32.mrb[8].mxu0  ;;  %v3990_v24 = vpack.i.bf16 %v741_v19, %v736_v21  ;;  %v1151_v19 = vld [vmem:[%s4326_s9 + $0x8] sm:$0xff] }
 0x18d   : > { %v751_v25 = vadd.f32 %v2634_v23, %v647_v4  ;;  %v745_v26 = vpop.f32.mrb[9].mxu0  ;;  %v3075_v21 = vpack.c.bf16 %v1151_v19, %v1150_v17 }
 0x18e   : > { %3053 = vmatpush3.bf16.xpose.msk.msra.mxu1 %vm3979_vm3, %v3051_v16  ;;  %v746_v27 = vadd.f32 %v745_v26, %v647_v4 }
 0x18f   : > { %3054 = vmatprep.subr.bf16.mxu1 %v3572_v0  ;;  %v4007_v30 = vpop.f32.mrb[2].mxu1 }
 0x190   : > { %v3059_v28 = vpack.c.bf16 %v751_v25, %v746_v27  ;;  %v3995_v29 = vpack.i.bf16 %v751_v25, %v746_v27  ;;  %v2669_v31 = vpop.f32.mrb[3].mxu1 }
 0x196   : > { %3057 = vmatpush3.bf16.xpose.msk.msra.mxu1 %vm3979_vm3, %v3055_v22  ;;  %v1153_v22 = vld [vmem:[%s4326_s9 + $0x18] sm:$0xff] }
 0x197   : > { %3058 = vmatprep.subr.bf16.mxu1 %v3572_v0  ;;  %v3078_v23 = vpack.c.bf16 %v1153_v22, %v1152_v20 }
 0x19e   : > { %3061 = vmatpush3.bf16.xpose.msk.msra.mxu1 %vm3979_vm3, %v3059_v28 }
 0x19f   : > { %3074 = vmatprep.subr.bf16.mxu1 %v3572_v0 }
 0x1a0   : > { %v2704_v32 = vpop.f32.mrb[10].mxu0 }
 0x1a1   : > { %v913_v33 = vpop.f32.mrb[11].mxu0  ;;  %v919_v41 = vadd.f32 %v2704_v32, %v845_v40 }
 0x1a2   : > { %v914_v42 = vadd.f32 %v913_v33, %v845_v40 }
 0x1a4   : > { %v2707_v34 = vpop.f32.mrb[12].mxu0  ;;  %v3063_v45 = vpack.c.bf16 %v919_v41, %v914_v42  ;;  %v4016_v46 = vpack.i.bf16 %v919_v41, %v914_v42 }
 0x1a5   : > { %2731 = vmatmul.mubr.msk.f32.vlgmr.msra.gmra.mrb[4].mxu1 %vm959_vm2, %v3970_v60  ;;  %v923_v35 = vpop.f32.mrb[13].mxu0  ;;  %v929_v43 = vadd.f32 %v2707_v34, %v845_v40 }
 0x1a6   : > { %2760 = vmatprep.mubr.msk.f32.mxu1 %vm3573_vm0, %v3574_v1  ;;  %v924_v44 = vadd.f32 %v923_v35, %v845_v40  ;;  %3064 = vmatpush3.bf16.msra.mxu0 %v3063_v45 }
 0x1a7   : > { %3065 = vmatprep.subr.bf16.mxu0 %v3572_v0  ;;  %3076 = vmatpush3.bf16.msra.mxu1 %v3075_v21 }
 0x1a8   : > { %v2710_v47 = vpop.f32.mrb[14].mxu0  ;;  %v3066_v48 = vpack.c.bf16 %v929_v43, %v924_v44  ;;  %v4019_v49 = vpack.i.bf16 %v929_v43, %v924_v44  ;;  %3077 = vmatprep.subr.bf16.mxu1 %v3572_v0 }
 0x1a9   : > { %v933_v50 = vpop.f32.mrb[15].mxu0  ;;  %v939_v51 = vadd.f32 %v2710_v47, %v845_v40 }
 0x1aa   : > { %v934_v52 = vadd.f32 %v933_v50, %v845_v40  ;;  %3067 = vmatpush3.bf16.msra.mxu0 %v3066_v48 }
 0x1ab   : > { %3068 = vmatprep.subr.bf16.mxu0 %v3572_v0  ;;  %3079 = vmatpush3.bf16.msra.mxu1 %v3078_v23 }
 0x1ac   : > { %v2713_v53 = vpop.f32.mrb[16].mxu0  ;;  %v3069_v56 = vpack.c.bf16 %v939_v51, %v934_v52  ;;  %v4024_v57 = vpack.i.bf16 %v939_v51, %v934_v52  ;;  %3080 = vmatprep.subr.bf16.mxu1 %v3572_v0 }
 0x1ad   : > { %v949_v54 = vadd.f32 %v2713_v53, %v845_v40  ;;  %v943_v55 = vpop.f32.mrb[17].mxu0 }
 0x1ae   : > { %v944_v58 = vadd.f32 %v943_v55, %v845_v40  ;;  %3070 = vmatpush3.bf16.msra.mxu0 %v3069_v56 }
 0x1af   : > { %3071 = vmatprep.subr.bf16.mxu0 %v3572_v0 }
 0x1b0   : > { %v3072_v59 = vpack.c.bf16 %v949_v54, %v944_v58  ;;  %v4029_v62 = vpack.i.bf16 %v949_v54, %v944_v58 }
 0x1b2   : > { %3073 = vmatpush3.bf16.msra.mxu0 %v3072_v59 }
 0x1b3   : > { %3096 = vmatprep.subr.bf16.mxu0 %v3572_v0 }
 0x1f5   : > { %v958_v63 = vpop.xlane.xlu0 %957 }
 0x278   : > { %v1053_v36 = vpop.f32.mrb[4].mxu1 }
 0x279   : > { %v2732_v37 = vpop.f32.mrb[5].mxu1  ;;  %v1058_v38 = vsel %vm1057_vm4, %v1053_v36, -inf }
 0x27a   : > { %1059 = vmax.xlane.f32.xlu0 %v1058_v38  ;;  %v4080_v37 = vadd.f32 %v4007_v30, %v4013_v39 }
 0x290   : > { %3273 = vrot.lane.b32.xlu0 %v3988_v18, %s3575_s16 }
 0x294   : > { %1229 = vrot.lane.b32.xlu0 %v3973_v61, %s3575_s16 }
 0x298   : > { %3288 = vrot.lane.b32.xlu0 %v4016_v46, %s3575_s16 }
 0x307   : > { %v1060_v2 = vpop.xlane.xlu0 %1059 }
 0x308   : > { %v1061_v3 = vmax.f32 %v1060_v2, %v958_v63 }
 0x30a   : > { %v1062_v4 = vsub.f32 %v958_v63, %v1061_v3  ;;  %v1065_v5 = vsub.f32 %v1053_v36, %v1061_v3 }
 0x30b   : > { %v4034_v6 = vpop.permute.xlu0 %3273 }
 0x30c   : > { %v1066_v7 = vmul.f32 1.442695, %v1065_v5  ;;  %v1063_v27 = vmul.f32 1.442695, %v1062_v4  ;;  %v3276_v39 = vunpack.i.h.bf16 %v4034_v6  ;;  %v3275_v58 = vunpack.i.l.bf16 %v4034_v6 }
 0x30e   : > { %3387 = vpow2.f32 %v1066_v7  ;;  %v3085_v59 = vpack.c.bf16 %v3276_v39, %v3275_v58 }
 0x30f   : > { %v1230_v8 = vpop.permute.xlu0 %1229  ;;  %3389 = vpow2.f32 %v1063_v27 }
 0x310   : > { %v1232_v25 = vsel %vm955_vm1, %v1230_v8, 0.0 }
 0x313   : > { %v3289_v11 = vpop.permute.xlu0 %3288 }
 0x314   : > { %v3291_v12 = vunpack.i.h.bf16 %v3289_v11  ;;  %v3290_v15 = vunpack.i.l.bf16 %v3289_v11 }
 0x316   : > { %v3097_v9 = vpack.c.bf16 %v3291_v12, %v3290_v15 }
 0x318   : > { %v3388_v13 = vpop.eup %3387 }
 0x319   : > { %2750 = vmatmul.mubr.msk.f32.vlgmr.msra.gmra.mrb[18].mxu0 %vm1073_vm5, %v3388_v13  ;;  %v1068_v16 = vsel %vm1057_vm4, %v3388_v13, 0.0  ;;  %v3390_v33 = vpop.eup %3389 }
 0x31a   : > { %1069 = vadd.xlane.f32.xlu1 %v1068_v16  ;;  %3098 = vmatpush3.bf16.msra.mxu0 %v3097_v9  ;;  %v1072_v38 = vmul.f32 %v3390_v33, %v4080_v37 }
 0x31b   : > { %3099 = vmatprep.subr.bf16.mxu0 %v3572_v0  ;;  %2798 = vmatprep.mubr.msk.f32.mxu0 %vm3573_vm0, %v3574_v1 }
 0x32b   : > { %3268 = vrot.lane.b32.xlu1 %v3983_v14, %s3575_s16 }
 0x32f   : > { %3278 = vrot.lane.b32.xlu1 %v3990_v24, %s3575_s16 }
 0x333   : > { %3283 = vrot.lane.b32.xlu1 %v3995_v29, %s3575_s16 }
 0x337   : > { %1235 = vrot.lane.b32.xlu1 %v3970_v60, %s3575_s16 }
 0x35b   : > { %1233 = vadd.xlane.f32.xlu1 %v1232_v25 }
 0x36c   : > { %3293 = vrot.lane.b32.xlu1 %v4019_v49, %s3575_s16 }
 0x370   : > { %3298 = vrot.lane.b32.xlu1 %v4024_v57, %s3575_s16 }
 0x374   : > { %3308 = vrot.lane.b32.xlu1 %v3983_v14, %s3576_s24 }
 0x378   : > { %3318 = vrot.lane.b32.xlu1 %v3990_v24, %s3576_s24 }
 0x37c   : > { %1554 = vrot.lane.b32.xlu1 %v3970_v60, %s3576_s24 }
 0x380   : > { %1548 = vrot.lane.b32.xlu1 %v3973_v61, %s3576_s24 }
 0x3a7   : > { %v1070_v26 = vpop.xlane.xlu1 %1069 }
 0x3a8   : > { %v1071_v34 = vadd.f32 %v3390_v33, %v1070_v26 }
 0x3aa   : > { %3391 = vrcp.f32 %v1071_v34 }
 0x3ab   : > { %v3269_v28 = vpop.permute.xlu1 %3268 }
 0x3ac   : > { %v3271_v40 = vunpack.i.h.bf16 %v3269_v28  ;;  %v3270_v41 = vunpack.i.l.bf16 %v3269_v28 }
 0x3ae   : > { %v3081_v53 = vpack.c.bf16 %v3271_v40, %v3270_v41 }
 0x3af   : > { %v3279_v31 = vpop.permute.xlu1 %3278 }
 0x3b0   : > { %v3281_v63 = vunpack.i.h.bf16 %v3279_v31  ;;  %v3280_v2 = vunpack.i.l.bf16 %v3279_v31 }
 0x3b2   : > { %v3089_v3 = vpack.c.bf16 %v3281_v63, %v3280_v2 }
 0x3b3   : > { %v3284_v32 = vpop.permute.xlu1 %3283 }
 0x3b4   : > { %v3392_v50 = vpop.eup %3391  ;;  %v3286_v4 = vunpack.i.h.bf16 %v3284_v32  ;;  %v3285_v5 = vunpack.i.l.bf16 %v3284_v32 }
 0x3b6   : > { %v3093_v6 = vpack.c.bf16 %v3286_v4, %v3285_v5 }
 0x3b7   : > { %v1236_v35 = vpop.permute.xlu1 %1235 }
 0x3e8   : > { %v4076_v36 = vpop.xlane.xlu1 %1233 }
 0x3ec   : > { %v1143_v42 = vpop.f32.mrb[18].mxu0  ;;  %v3294_v43 = vpop.permute.xlu1 %3293 }
 0x3ed   : > { %v1147_v44 = vadd.f32 %v1143_v42, %v1072_v38  ;;  %v3296_v45 = vunpack.i.h.bf16 %v3294_v43  ;;  %v3295_v47 = vunpack.i.l.bf16 %v3294_v43  ;;  %v2751_v48 = vpop.f32.mrb[19].mxu0 }
 0x3ef   : > { %v1149_v51 = vmul.f32 %v3392_v50, %v1147_v44  ;;  %v3100_v52 = vpack.c.bf16 %v3296_v45, %v3295_v47 }
 0x3f0   : > { %v3299_v54 = vpop.permute.xlu1 %3298 }
 0x3f1   : > { %v3301_v55 = vunpack.i.h.bf16 %v3299_v54  ;;  %v3300_v56 = vunpack.i.l.bf16 %v3299_v54  ;;  %2761 = vmatmul.mubr.msk.f32.vlgmr.msra.gmra.mrb[6].mxu1 %vm959_vm2, %v1149_v51  ;;  %3101 = vmatpush3.bf16.msra.mxu0 %v3100_v52 }
 0x3f2   : > { %3083 = vmatpush3.bf16.xpose.msk.msra.mxu1 %vm3979_vm3, %v3081_v53  ;;  %3102 = vmatprep.subr.bf16.mxu0 %v3572_v0 }
 0x3f3   : > { %v3103_v30 = vpack.c.bf16 %v3301_v55, %v3300_v56  ;;  %3084 = vmatprep.subr.bf16.mxu1 %v3572_v0  ;;  %2779 = vmatprep.mubr.msk.f32.mxu1 %vm3573_vm0, %v3574_v1  ;;  %v1468_v55 = vld [vmem:[%s4326_s9 + $0x20] sm:$0xff]  ;;  %v1469_v56 = vld [vmem:[%s4326_s9 + $0x28] sm:$0xff] }
 0x3f4   : > { %v3309_v21 = vpop.permute.xlu1 %3308  ;;  %v3109_v39 = vpack.c.bf16 %v1469_v56, %v1468_v55 }
 0x3f5   : > { %3104 = vmatpush3.bf16.msra.mxu0 %v3103_v30  ;;  %v3311_v22 = vunpack.i.h.bf16 %v3309_v21  ;;  %v3310_v23 = vunpack.i.l.bf16 %v3309_v21  ;;  %v1470_v30 = vld [vmem:[%s4326_s9 + $0x30] sm:$0xff] }
 0x3f6   : > { %3105 = vmatprep.subr.bf16.mxu0 %v3572_v0 }
 0x3f7   : > { %v3115_v26 = vpack.c.bf16 %v3311_v22, %v3310_v23 }
 0x3f8   : > { %v3319_v34 = vpop.permute.xlu1 %3318 }
 0x3f9   : > { %v3320_v38 = vunpack.i.l.bf16 %v3319_v34 }
 0x3fa   : > { %3087 = vmatpush3.bf16.xpose.msk.msra.mxu1 %vm3979_vm3, %v3085_v59 }
 0x3fb   : > { %3088 = vmatprep.subr.bf16.mxu1 %v3572_v0 }
 0x3fc   : > { %v1555_v45 = vpop.permute.xlu1 %1554 }
 0x400   : > { %v1549_v51 = vpop.permute.xlu1 %1548 }
 0x401   : > { %v1551_v54 = vsel %vm955_vm1, %v1549_v51, 0.0 }
 0x402   : > { %3091 = vmatpush3.bf16.xpose.msk.msra.mxu1 %vm3979_vm3, %v3089_v3 }
 0x403   : > { %3092 = vmatprep.subr.bf16.mxu1 %v3572_v0 }
 0x40a   : > { %3095 = vmatpush3.bf16.xpose.msk.msra.mxu1 %vm3979_vm3, %v3093_v6 }
 0x40b   : > { %3108 = vmatprep.subr.bf16.mxu1 %v3572_v0 }
 0x411   : > { %2780 = vmatmul.mubr.msk.f32.vlgmr.msra.gmra.mrb[8].mxu1 %vm959_vm2, %v1236_v35  ;;  %v3321_v35 = vunpack.i.h.bf16 %v3319_v34 }
 0x412   : > { %2809 = vmatprep.mubr.msk.f32.mxu1 %vm3573_vm0, %v3574_v1  ;;  %3110 = vmatpush3.bf16.msra.mxu1 %v3109_v39 }
 0x413   : > { %v3123_v40 = vpack.c.bf16 %v3321_v35, %v3320_v38  ;;  %3111 = vmatprep.subr.bf16.mxu1 %v3572_v0 }
 0x4e4   : > { %v1337_v7 = vpop.f32.mrb[8].mxu1 }
 0x4e5   : > { %v2781_v8 = vpop.f32.mrb[9].mxu1  ;;  %v1341_v11 = vsel %vm1057_vm4, %v1337_v7, -inf }
 0x4e6   : > { %1342 = vmax.xlane.f32.xlu0 %v1341_v11 }
 0x4fc   : > { %3303 = vrot.lane.b32.xlu0 %v4029_v62, %s3575_s16 }
 0x500   : > { %3313 = vrot.lane.b32.xlu0 %v3988_v18, %s3576_s24 }
 0x504   : > { %3323 = vrot.lane.b32.xlu0 %v3995_v29, %s3576_s24 }
 0x573   : > { %v1343_v12 = vpop.xlane.xlu0 %1342 }
 0x574   : > { %v4113_v15 = vmax.f32 %v1343_v12, %v4076_v36 }
 0x576   : > { %v1348_v9 = vsub.f32 %v1337_v7, %v4113_v15  ;;  %v1345_v58 = vsub.f32 %v4076_v36, %v4113_v15 }
 0x577   : > { %v3304_v13 = vpop.permute.xlu0 %3303 }
 0x578   : > { %v1349_v16 = vmul.f32 1.442695, %v1348_v9  ;;  %v3306_v17 = vunpack.i.h.bf16 %v3304_v13  ;;  %v3305_v19 = vunpack.i.l.bf16 %v3304_v13  ;;  %v1346_v59 = vmul.f32 1.442695, %v1345_v58 }
 0x57a   : > { %v3106_v20 = vpack.c.bf16 %v3306_v17, %v3305_v19  ;;  %3393 = vpow2.f32 %v1349_v16 }
 0x57b   : > { %v3314_v27 = vpop.permute.xlu0 %3313  ;;  %3395 = vpow2.f32 %v1346_v59 }
 0x57c   : > { %3107 = vmatpush3.bf16.msra.mxu0 %v3106_v20  ;;  %v3316_v31 = vunpack.i.h.bf16 %v3314_v27  ;;  %v3315_v32 = vunpack.i.l.bf16 %v3314_v27 }
 0x57d   : > { %3114 = vmatprep.subr.bf16.mxu0 %v3572_v0 }
 0x57e   : > { %v3119_v33 = vpack.c.bf16 %v3316_v31, %v3315_v32 }
 0x57f   : > { %v3324_v41 = vpop.permute.xlu0 %3323 }
 0x580   : > { %v3326_v42 = vunpack.i.h.bf16 %v3324_v41  ;;  %v3325_v43 = vunpack.i.l.bf16 %v3324_v41 }
 0x582   : > { %v3127_v44 = vpack.c.bf16 %v3326_v42, %v3325_v43 }
 0x584   : > { %v3394_v25 = vpop.eup %3393 }
 0x585   : > { %2799 = vmatmul.mubr.msk.f32.vlgmr.msra.gmra.mrb[20].mxu0 %vm1073_vm5, %v3394_v25  ;;  %v1351_v28 = vsel %vm1057_vm4, %v3394_v25, 0.0  ;;  %v3396_v63 = vpop.eup %3395 }
 0x586   : > { %3117 = vmatpush3.bf16.xpose.msk.msra.mxu0 %vm3979_vm3, %v3115_v26  ;;  %1352 = vadd.xlane.f32.xlu0 %v1351_v28  ;;  %v1355_v3 = vmul.f32 %v3396_v63, %v4080_v37 }
 0x587   : > { %3118 = vmatprep.subr.bf16.mxu0 %v3572_v0  ;;  %2828 = vmatprep.mubr.msk.f32.mxu0 %vm3573_vm0, %v3574_v1 }
 0x58e   : > { %3121 = vmatpush3.bf16.xpose.msk.msra.mxu0 %vm3979_vm3, %v3119_v33 }
 0x58f   : > { %3122 = vmatprep.subr.bf16.mxu0 %v3572_v0 }
 0x596   : > { %3125 = vmatpush3.bf16.xpose.msk.msra.mxu0 %vm3979_vm3, %v3123_v40 }
 0x597   : > { %3126 = vmatprep.subr.bf16.mxu0 %v3572_v0 }
 0x59c   : > { %3328 = vrot.lane.b32.xlu0 %v4016_v46, %s3576_s24 }
 0x59e   : > { %3129 = vmatpush3.bf16.xpose.msk.msra.mxu0 %vm3979_vm3, %v3127_v44 }
 0x59f   : > { %3148 = vmatprep.subr.bf16.mxu0 %v3572_v0 }
 0x5a5   : > { %2829 = vmatmul.mubr.msk.f32.vlgmr.msra.gmra.mrb[22].mxu0 %vm959_vm2, %v1555_v45 }
 0x5a6   : > { %2877 = vmatprep.mubr.msk.f32.mxu0 %vm3573_vm0, %v3574_v1 }
 0x658   : > { %v1457_v47 = vpop.f32.mrb[20].mxu0 }
 0x659   : > { %1462 = vrot.lane.b32.xlu1 %v1457_v47, %s3577_s26  ;;  %v2800_v48 = vpop.f32.mrb[21].mxu0 }
 0x678   : > { %v1656_v50 = vpop.f32.mrb[22].mxu0 }
 0x679   : > { %v2830_v52 = vpop.f32.mrb[23].mxu0  ;;  %v1660_v53 = vsel %vm1057_vm4, %v1656_v50, -inf }
 0x67a   : > { %1661 = vmax.xlane.f32.xlu0 %v1660_v53 }
 0x67d   : > { %1552 = vadd.xlane.f32.xlu1 %v1551_v54 }
 0x690   : > { %3333 = vrot.lane.b32.xlu0 %v4019_v49, %s3576_s24 }
 0x694   : > { %3338 = vrot.lane.b32.xlu0 %v4024_v57, %s3576_s24 }
 0x698   : > { %3348 = vrot.lane.b32.xlu0 %v3983_v14, %s3577_s26  ;;  %v1471_v14 = vld [vmem:[%s4326_s9 + $0x38] sm:$0xff] }
 0x69c   : > { %3358 = vrot.lane.b32.xlu0 %v3990_v24, %s3577_s26  ;;  %v3112_v24 = vpack.c.bf16 %v1471_v14, %v1470_v30 }
 0x69e   : > { %3113 = vmatpush3.bf16.msra.mxu1 %v3112_v24 }
 0x69f   : > { %3130 = vmatprep.subr.bf16.mxu1 %v3572_v0 }
 0x6a0   : > { %1865 = vrot.lane.b32.xlu0 %v3970_v60, %s3577_s26  ;;  %v1353_v60 = vpop.xlane.xlu0 %1352 }
 0x6a1   : > { %v1354_v2 = vadd.f32 %v3396_v63, %v1353_v60  ;;  %v1780_v63 = vld [vmem:[%s4326_s9 + $0x48] sm:$0xff] }
 0x6a3   : > { %3397 = vrcp.f32 %v1354_v2  ;;  %v1781_v2 = vld [vmem:[%s4326_s9 + $0x50] sm:$0xff] }
 0x6a4   : > { %1859 = vrot.lane.b32.xlu0 %v3973_v61, %s3577_s26  ;;  %v3329_v61 = vpop.permute.xlu0 %3328 }
 0x6a5   : > { %v3331_v22 = vunpack.i.h.bf16 %v3329_v61  ;;  %v3330_v23 = vunpack.i.l.bf16 %v3329_v61 }
 0x6a7   : > { %v3131_v25 = vpack.c.bf16 %v3331_v22, %v3330_v23 }
 0x6ad   : > { %v3398_v6 = vpop.eup %3397 }
 0x6cb   : > { %v1463_v4 = vpop.permute.xlu1 %1462 }
 0x6cc   : > { %v1465_v5 = vadd.f32 %v1463_v4, %v1355_v3  ;;  %v3143_v3 = vpack.c.bf16 %v1780_v63, %v1779_v10 }
 0x6ce   : > { %v1467_v7 = vmul.f32 %v3398_v6, %v1465_v5 }
 0x6d0   : > { %1473 = vrot.lane.b32.xlu1 %v1467_v7, %s3575_s16 }
 0x6d4   : > { %3343 = vrot.lane.b32.xlu1 %v4029_v62, %s3576_s24 }
 0x6d8   : > { %3353 = vrot.lane.b32.xlu1 %v3988_v18, %s3577_s26 }
 0x6dc   : > { %3363 = vrot.lane.b32.xlu1 %v3995_v29, %s3577_s26 }
 0x707   : > { %v1662_v36 = vpop.xlane.xlu0 %1661 }
 0x70a   : > { %v4177_v8 = vpop.xlane.xlu1 %1552 }
 0x70b   : > { %v4180_v11 = vmax.f32 %v1662_v36, %v4177_v8  ;;  %v3334_v12 = vpop.permute.xlu0 %3333 }
 0x70c   : > { %v3336_v26 = vunpack.i.h.bf16 %v3334_v12  ;;  %v3335_v27 = vunpack.i.l.bf16 %v3334_v12 }
 0x70d   : > { %v1664_v15 = vsub.f32 %v4177_v8, %v4180_v11  ;;  %v1667_v9 = vsub.f32 %v1656_v50, %v4180_v11 }
 0x70e   : > { %v3134_v31 = vpack.c.bf16 %v3336_v26, %v3335_v27 }
 0x70f   : > { %v1668_v13 = vmul.f32 1.442695, %v1667_v9  ;;  %v3339_v16 = vpop.permute.xlu0 %3338 }
 0x710   : > { %v3341_v32 = vunpack.i.h.bf16 %v3339_v16  ;;  %v3340_v33 = vunpack.i.l.bf16 %v3339_v16 }
 0x711   : > { %3399 = vpow2.f32 %v1668_v13 }
 0x712   : > { %v3137_v35 = vpack.c.bf16 %v3341_v32, %v3340_v33 }
 0x713   : > { %v3349_v18 = vpop.permute.xlu0 %3348 }
 0x714   : > { %v3351_v17 = vunpack.i.h.bf16 %v3349_v18  ;;  %v3350_v19 = vunpack.i.l.bf16 %v3349_v18 }
 0x716   : > { %v3149_v29 = vpack.c.bf16 %v3351_v17, %v3350_v19 }
 0x717   : > { %v3359_v45 = vpop.permute.xlu0 %3358 }
 0x718   : > { %3151 = vmatpush3.bf16.xpose.msk.msra.mxu0 %vm3979_vm3, %v3149_v29  ;;  %v3361_v48 = vunpack.i.h.bf16 %v3359_v45  ;;  %v3360_v50 = vunpack.i.l.bf16 %v3359_v45  ;;  %v2093_v45 = vld [vmem:[%s4326_s9 + $0x78] sm:$0xff] }
 0x719   : > { %3152 = vmatprep.subr.bf16.mxu0 %v3572_v0 }
 0x71a   : > { %v3157_v51 = vpack.c.bf16 %v3361_v48, %v3360_v50 }
 0x71b   : > { %v3400_v20 = vpop.eup %3399  ;;  %v1866_v56 = vpop.permute.xlu0 %1865 }
 0x71c   : > { %v1670_v21 = vsel %vm1057_vm4, %v3400_v20, 0.0 }
 0x71d   : > { %1671 = vadd.xlane.f32.xlu1 %v1670_v21 }
 0x71f   : > { %v1860_v59 = vpop.permute.xlu0 %1859 }
 0x720   : > { %v1862_v60 = vsel %vm955_vm1, %v1860_v59, 0.0 }
 0x742   : > { %v1474_v28 = vpop.permute.xlu1 %1473 }
 0x743   : > { %2810 = vmatmul.mubr.msk.f32.vlgmr.msra.gmra.mrb[6].mxu1 %vm959_vm2, %v1474_v28 }
 0x744   : > { %3132 = vmatpush3.bf16.msra.mxu1 %v3131_v25  ;;  %2847 = vmatprep.mubr.msk.f32.mxu1 %vm3573_vm0, %v3574_v1 }
 0x745   : > { %3133 = vmatprep.subr.bf16.mxu1 %v3572_v0 }
 0x746   : > { %v3344_v34 = vpop.permute.xlu1 %3343 }
 0x747   : > { %v3346_v38 = vunpack.i.h.bf16 %v3344_v34  ;;  %v3345_v40 = vunpack.i.l.bf16 %v3344_v34 }
 0x748   : > { %3135 = vmatpush3.bf16.msra.mxu1 %v3134_v31 }
 0x749   : > { %3136 = vmatprep.subr.bf16.mxu1 %v3572_v0  ;;  %v3140_v47 = vpack.c.bf16 %v3346_v38, %v3345_v40 }
 0x74a   : > { %v3354_v41 = vpop.permute.xlu1 %3353 }
 0x74b   : > { %v3356_v42 = vunpack.i.h.bf16 %v3354_v41  ;;  %v3355_v43 = vunpack.i.l.bf16 %v3354_v41  ;;  %v2090_v41 = vld [vmem:[%s4326_s9 + $0x60] sm:$0xff] }
 0x74c   : > { %3138 = vmatpush3.bf16.msra.mxu1 %v3137_v35 }
 0x74d   : > { %v3153_v44 = vpack.c.bf16 %v3356_v42, %v3355_v43  ;;  %3139 = vmatprep.subr.bf16.mxu1 %v3572_v0  ;;  %v2091_v42 = vld [vmem:[%s4326_s9 + $0x68] sm:$0xff]  ;;  %v2092_v43 = vld [vmem:[%s4326_s9 + $0x70] sm:$0xff] }
 0x74e   : > { %v3364_v52 = vpop.permute.xlu1 %3363 }
 0x74f   : > { %3155 = vmatpush3.bf16.xpose.msk.msra.mxu0 %vm3979_vm3, %v3153_v44  ;;  %v3366_v53 = vunpack.i.h.bf16 %v3364_v52  ;;  %v3365_v54 = vunpack.i.l.bf16 %v3364_v52  ;;  %v3177_v44 = vpack.c.bf16 %v2091_v42, %v2090_v41 }
 0x750   : > { %3141 = vmatpush3.bf16.msra.mxu1 %v3140_v47  ;;  %3156 = vmatprep.subr.bf16.mxu0 %v3572_v0  ;;  %v3180_v47 = vpack.c.bf16 %v2093_v45, %v2092_v43 }
 0x751   : > { %3142 = vmatprep.subr.bf16.mxu1 %v3572_v0  ;;  %v3161_v55 = vpack.c.bf16 %v3366_v53, %v3365_v54 }
 0x753   : > { %2848 = vmatmul.mubr.msk.f32.vlgmr.msra.gmra.mrb[10].mxu1 %vm1073_vm5, %v3400_v20 }
 0x754   : > { %2858 = vmatprep.mubr.msk.f32.mxu1 %vm3573_vm0, %v3574_v1  ;;  %3144 = vmatpush3.bf16.msra.mxu1 %v3143_v3 }
 0x755   : > { %3145 = vmatprep.subr.bf16.mxu1 %v3572_v0 }
 0x757   : > { %3159 = vmatpush3.bf16.xpose.msk.msra.mxu0 %vm3979_vm3, %v3157_v51 }
 0x758   : > { %3160 = vmatprep.subr.bf16.mxu0 %v3572_v0 }
 0x75f   : > { %3163 = vmatpush3.bf16.xpose.msk.msra.mxu0 %vm3979_vm3, %v3161_v55 }
 0x766   : > { %2878 = vmatmul.mubr.msk.f32.vlgmr.msra.gmra.mrb[24].mxu0 %vm959_vm2, %v1866_v56 }
 0x7aa   : > { %v1672_v5 = vpop.xlane.xlu1 %1671 }
 0x826   : > { %v1768_v30 = vpop.f32.mrb[10].mxu1 }
 0x827   : > { %1773 = vrot.lane.b32.xlu0 %v1768_v30, %s3576_s24  ;;  %v2849_v39 = vpop.f32.mrb[11].mxu1 }
 0x839   : > { %v1967_v14 = vpop.f32.mrb[24].mxu0 }
 0x83a   : > { %v2879_v24 = vpop.f32.mrb[25].mxu0  ;;  %v1971_v58 = vsel %vm1057_vm4, %v1967_v14, -inf }
 0x83b   : > { %1972 = vmax.xlane.f32.xlu1 %v1971_v58 }
 0x846   : > { %1863 = vadd.xlane.f32.xlu0 %v1862_v60 }
 0x85c   : > { %3368 = vrot.lane.b32.xlu0 %v4016_v46, %s3577_s26  ;;  %v1782_v46 = vld [vmem:[%s4326_s9 + $0x58] sm:$0xff] }
 0x85d   : > { %v3146_v4 = vpack.c.bf16 %v1782_v46, %v1781_v2 }
 0x85f   : > { %3147 = vmatpush3.bf16.msra.mxu1 %v3146_v4 }
 0x860   : > { %3383 = vrot.lane.b32.xlu0 %v4029_v62, %s3577_s26  ;;  %3164 = vmatprep.subr.bf16.mxu1 %v3572_v0  ;;  %v1665_v62 = vmul.f32 1.442695, %v1664_v15 }
 0x862   : > { %3401 = vpow2.f32 %v1665_v62 }
 0x86c   : > { %v3402_v6 = vpop.eup %3401 }
 0x86d   : > { %v1673_v7 = vadd.f32 %v3402_v6, %v1672_v5  ;;  %v1674_v61 = vmul.f32 %v3402_v6, %v4080_v37 }
 0x86f   : > { %3403 = vrcp.f32 %v1673_v7 }
 0x879   : > { %v3404_v9 = vpop.eup %3403 }
 0x899   : > { %v1774_v36 = vpop.permute.xlu0 %1773 }
 0x89a   : > { %v1776_v12 = vadd.f32 %v1774_v36, %v1674_v61 }
 0x89c   : > { %v1778_v13 = vmul.f32 %v3404_v9, %v1776_v12 }
 0x89e   : > { %1784 = vrot.lane.b32.xlu1 %v1778_v13, %s3576_s24  ;;  %s4358_s24 = sld [smem:[#allocation18_spill]] }
 0x8a2   : > { %3373 = vrot.lane.b32.xlu1 %v4019_v49, %s3577_s26 }
 0x8a4   : > { %s4274_s28 = scalar_lea.hbm %s4358_s24, %s2326_s29 }
 0x8a6   : > { %3378 = vrot.lane.b32.xlu1 %v4024_v57, %s3577_s26 }
 0x8c8   : > { %v1973_v8 = vpop.xlane.xlu1 %1972 }
 0x8d3   : > { %v1864_v11 = vpop.xlane.xlu0 %1863 }
 0x8d4   : > { %v1974_v15 = vmax.f32 %v1973_v8, %v1864_v11 }
 0x8d6   : > { %v1975_v16 = vsub.f32 %v1864_v11, %v1974_v15  ;;  %v1978_v18 = vsub.f32 %v1967_v14, %v1974_v15  ;;  %v952_v14 = vld [vmem:[%s4327_s10] sm:$0x1] }
 0x8d7   : > { %v3369_v20 = vpop.permute.xlu0 %3368 }
 0x8d8   : > { %v1979_v17 = vmul.f32 1.442695, %v1978_v18  ;;  %v3371_v21 = vunpack.i.h.bf16 %v3369_v20  ;;  %v3370_v22 = vunpack.i.l.bf16 %v3369_v20  ;;  %v1976_v50 = vmul.f32 1.442695, %v1975_v16 }
 0x8da   : > { %3405 = vpow2.f32 %v1979_v17  ;;  %v3165_v23 = vpack.c.bf16 %v3371_v21, %v3370_v22 }
 0x8db   : > { %v3384_v28 = vpop.permute.xlu0 %3383  ;;  %3407 = vpow2.f32 %v1976_v50 }
 0x8dc   : > { %v3386_v34 = vunpack.i.h.bf16 %v3384_v28  ;;  %v3385_v35 = vunpack.i.l.bf16 %v3384_v28 }
 0x8de   : > { %v3174_v40 = vpack.c.bf16 %v3386_v34, %v3385_v35 }
 0x8e4   : > { %v3406_v19 = vpop.eup %3405 }
 0x8e5   : > { %v1981_v29 = vsel %vm1057_vm4, %v3406_v19, 0.0  ;;  %v3408_v52 = vpop.eup %3407 }
 0x8e6   : > { %1982 = vadd.xlane.f32.xlu1 %v1981_v29  ;;  %v1985_v54 = vmul.f32 %v3408_v52, %v4080_v37 }
 0x910   : > { %v1785_v25 = vpop.permute.xlu1 %1784 }
 0x911   : > { %2859 = vmatmul.mubr.msk.f32.vlgmr.msra.gmra.mrb[6].mxu1 %vm959_vm2, %v1785_v25 }
 0x912   : > { %3166 = vmatpush3.bf16.msra.mxu1 %v3165_v23  ;;  %2896 = vmatprep.mubr.msk.f32.mxu1 %vm3573_vm0, %v3574_v1 }
 0x913   : > { %3167 = vmatprep.subr.bf16.mxu1 %v3572_v0 }
 0x914   : > { %v3374_v49 = vpop.permute.xlu1 %3373 }
 0x915   : > { %v3376_v57 = vunpack.i.h.bf16 %v3374_v49  ;;  %v3375_v26 = vunpack.i.l.bf16 %v3374_v49 }
 0x917   : > { %v3168_v27 = vpack.c.bf16 %v3376_v57, %v3375_v26 }
 0x918   : > { %v3379_v31 = vpop.permute.xlu1 %3378 }
 0x919   : > { %v3381_v32 = vunpack.i.h.bf16 %v3379_v31  ;;  %v3380_v33 = vunpack.i.l.bf16 %v3379_v31  ;;  %3169 = vmatpush3.bf16.msra.mxu1 %v3168_v27 }
 0x91a   : > { %3170 = vmatprep.subr.bf16.mxu1 %v3572_v0 }
 0x91b   : > { %v3171_v38 = vpack.c.bf16 %v3381_v32, %v3380_v33 }
 0x91d   : > { %3172 = vmatpush3.bf16.msra.mxu1 %v3171_v38 }
 0x91e   : > { %3173 = vmatprep.subr.bf16.mxu1 %v3572_v0 }
 0x921   : > { %3175 = vmatpush3.bf16.msra.mxu1 %v3174_v40 }
 0x922   : > { %3176 = vmatprep.subr.bf16.mxu1 %v3572_v0 }
 0x924   : > { %2897 = vmatmul.mubr.msk.f32.vlgmr.msra.gmra.mrb[12].mxu1 %vm1073_vm5, %v3406_v19 }
 0x925   : > { %2907 = vmatprep.mubr.msk.f32.mxu1 %vm3573_vm0, %v3574_v1  ;;  %3178 = vmatpush3.bf16.msra.mxu1 %v3177_v44 }
 0x926   : > { %3179 = vmatprep.subr.bf16.mxu1 %v3572_v0 }
 0x929   : > { %3181 = vmatpush3.bf16.msra.mxu1 %v3180_v47 }
 0x973   : > { %v1983_v51 = vpop.xlane.xlu1 %1982 }
 0x974   : > { %v1984_v53 = vadd.f32 %v3408_v52, %v1983_v51 }
 0x976   : > { %3409 = vrcp.f32 %v1984_v53 }
 0x980   : > { %v3410_v30 = vpop.eup %3409 }
 0x9f7   : > { %v2079_v1 = vpop.f32.mrb[12].mxu1 }
 0x9f8   : > { %2084 = vrot.lane.b32.xlu0 %v2079_v1, %s3575_s16  ;;  %v2898_v48 = vpop.f32.mrb[13].mxu1  ;;  %s421_s16 = sand.u32 1, %s3557_s18  }
 0x9f9   : > { %s422_s13 = scalar_lea.vmem [#allocation8], %s421_s16 }
 0x9fa   : > { %s2184_s22 = sshll.u32 %s422_s13, 4  ;;  %s4276_s22 = int_to_ptr.vmem [resolvable:$true] %s2184_s22 }
 0x9fb   : > { %s3495_s25 = scalar_lea.vmem %s4276_s22, 16  ;;  %p3502_p13 = scmp.lt.s32.totalorder %s4276_s22, %s3500_s30 }
 0x9fc   : > { %p3496_p4 = scmp.ne.s32.totalorder %s4276_s22, %s3495_s25  ;;  %p3503_p1 = scmp.lt.s32.totalorder %s3501_s14, %s3495_s25 }
 0x9fe   : > { %p3497_p8 = pnand %p3496_p4, %p4359_p7  ;;  %p3504_p6 = por %p3503_p1, %p3502_p13 }
 0xa00   : > { %p3498_p11 = pneg %p3497_p8 }
 0xa02   : > { %p3505_p9 = pnand %p3504_p6, %p3498_p11 }
 0xa6a   : > { %v2085_v55 = vpop.permute.xlu0 %2084 }
 0xa6b   : > { %v2087_v56 = vadd.f32 %v2085_v55, %v1985_v54 }
 0xa6d   : > { %v2089_v39 = vmul.f32 %v3410_v30, %v2087_v56 }
 0xa6f   : > { %2095 = vrot.lane.b32.xlu0 %v2089_v39, %s3577_s26  ;;  %s2172_s26 = scalar_lea.sflag [#allocation4], %s421_s16 }
 0xae1   : > { %v2096_v0 = vpop.permute.xlu0 %2095 }
 0xae2   : > { %2908 = vmatmul.mubr.msk.f32.vlgmr.msra.gmra.mrb[6].mxu1 %vm959_vm2, %v2096_v0 }
 0xbb5   : > { %v2165_v24 = vpop.f32.mrb[6].mxu1 }
 0xbb6   : > { %v3182_v37 = vadd.f32 %v2165_v24, %v952_v14  ;;  %v2909_v58 = vpop.f32.mrb[7].mxu1 }
 0xbb8   : > { %2170 = vst.msk [vmem:[%s422_s13] sm:$0x1] %vm1057_vm4, %v3182_v37 }
 0xbb9   : > { %3508 = shalt.err (!%p3505_p9)
}
 0xbba   : > { %s3509_s19 = scalar_lea.hbm %s4274_s28, 16  ;;  %s3513_s16 = scalar_lea.hbm %s4358_s24, 32 }
 0xbbb   : > { %p3510_p2 = scmp.ne.s32.totalorder %s4274_s28, %s3509_s19  ;;  %p3514_p5 = scmp.lt.u32.totalorder %s4274_s28, %s4358_s24 }
 0xbbc   : > { %p3515_p10 = scmp.lt.u32.totalorder %s3513_s16, %s3509_s19  ;;  %p3517_p4 = scmp.lt.u32.totalorder %s3509_s19, %s4274_s28 }
 0xbbd   : > { %p3511_p0 = pnand %p3510_p2, %p4359_p7 }
 0xbbe   : > { %p3516_p12 = por %p3515_p10, %p3514_p5 }
 0xbbf   : > { %p3512_p3 = pneg %p3511_p0 }
 0xbc0   : > { %p3518_p8 = por %p3517_p4, %p3516_p12 }
 0xbc2   : > { %p3519_p11 = pnand %p3518_p8, %p3512_p3 }
 0xbc4   : > { %3522 = shalt.err (!%p3519_p11)
}
 0xbc5   : > { %3201 = dma.vmem_to_hbm [thread:$0]  (%p4359_p7), %s4276_s22, 16, %s4274_s28, %s2172_s26  }
 0xbc6 PF: > { %s4360_s29 = sld [smem:[#allocation14_spill]]  ;;  %s4361_s13 = sld [smem:[#allocation12_spill]] }
 0xbc7   : > { %s4362_s17 = sld [smem:[#allocation17_spill]] }
 0xbcc   : > { %p3223_p13 = scmp.ge.s32.totalorder %s4360_s29, 2  ;;  %s2196_s20 = sand.u32 1, %s4361_s13  }
 0xbcd   : > { %p4363_p1 = scmp.ne.s32.totalorder %s4362_s17, 0  ;;  %s2197_s25 = scalar_lea.sflag [#allocation4], %s2196_s20 }
 0xbcf   : > { %p3214_p6 = pnand %p3223_p13, %p4363_p1 }
 0xbd1   : > { %3548 = dma.done.wait (!%p3214_p6), %s2197_s25, 16  }
 0xbd2   : > { %3550 = vsyncadd (!%p3214_p6), %s2197_s25, 4294967280  ;;  %s4364_s20 = sld [smem:[#allocation15_spill]]  ;;  %s4365_s21 = sld [smem:[#allocation13_spill]] }
 0xbd3   : > { %s4366_s19 = sld [smem:[#allocation16_spill]]  ;;  %s4367_s17 = smov %s3557_s18 }
 0xbd8   : > { %p23_p9 = scmp.ge.s32.totalorder %s4364_s20, 4   ;;  %s4368_s18 = smov %s4365_s21 }
 0xbda   :  { %25 = sbr.rel (!%p23_p9) target bundleno = 7 (0x7), region = 112 }
 0xbe1   :  { %2201 = vsyncpa [#allocation3], 1 }
 0xbe2   :  { %2203 = vsyncpa [#allocation3 + $0x1], 1 }
 0xbe3   :  { %2204 = vsyncpa [#allocation6], 1 }
 0xbe4   :  { %2205 = vsyncpa [#allocation4], 1 }
 0xbe5   :  { %2207 = vsyncpa [#allocation4 + $0x1], 1 }

</bundles_post_ra>
